<compile_context>
chip_gen: v5e
topology: v5e:2x2
jax: 0.10.0
libtpu: 0.0.40
codegen_flags: <defaults>
</compile_context>

<pallas_src>
import math

import jax
import jax.numpy as jnp
from jax.experimental import pallas as pl
from jax.experimental.pallas import tpu as pltpu

# ----- model hyper-parameters (small, consistent with the module) -----
NUM_FEATURES = 32          # d_model
NUM_HEADS = 4
HEAD_DIM = NUM_FEATURES // NUM_HEADS
SEQ_LENGTH = 16            # embedding_layer in_features and fc3 out_features
NUM_SEQS = 8               # number of "sequences" (rows of src/tgt)
DIM_FF = 2048              # nn.TransformerEncoderLayer default dim_feedforward
LN_EPS = 1e-5
DTYPE = jnp.float32

D, S, L, F = NUM_FEATURES, NUM_SEQS, SEQ_LENGTH, DIM_FF

# ----- packed weight-slab layout (f32, [SLAB_ROWS, SLAB_W]) -----
SLAB_W = 256                    # == S * D, also >= 3*D
R_EMB_W = 0                     # [L, D]      rows 0..15,  cols 0:32
R_QKV_W = 16                    # [D, 3D]     rows 16..47, cols 0:96
R_WO = 48                       # [D, D]      rows 48..79, cols 0:32
R_FC1_W = 80                    # [D, S*D]    rows 80..111, cols 0:256  (rearranged, see wrapper)
R_FC2_W = 112                   # [D, D//2]   rows 112..143, cols 0:16
R_FC3_W = 144                   # [D//2, L]   rows 144..159, cols 0:16
R_EMB_B = 160                   # one row each below
R_QKV_B = 161                   # cols 0:96
R_BO = 162
R_LN1_G, R_LN1_B = 163, 164
R_FF2_B = 165
R_LN2_G, R_LN2_B = 166, 167
R_FC1_B = 168
R_FC2_B = 169                   # cols 0:16
R_FC3_B = 170                   # cols 0:16
SLAB_ROWS = 176                 # padded to a multiple of 8 (f32 sublane tile)

FF1_ROWS = 48                   # bf16 slab: rows 0..31 = ff1_w [D, F], row 32 = ff1_b,
                                # padded to a multiple of 16 (bf16 sublane tile)


def _layernorm(x, gamma, beta):
    mean = jnp.mean(x, axis=-1, keepdims=True)
    var = jnp.mean((x - mean) * (x - mean), axis=-1, keepdims=True)
    inv = jax.lax.rsqrt(var + LN_EPS)
    return (x - mean) * inv * gamma + beta


def _silu(x):
    return x * jax.nn.sigmoid(x)


def transformer_kernel(src_ref, ws_ref, ff1_ref, ff2_ref, out_ref):
    f32 = jnp.float32
    bf16 = jnp.bfloat16

    def wsl(row, nrows, ncols):
        # Load `nrows` full-width rows from the packed slab, keep first `ncols` lanes.
        return ws_ref[pl.ds(row, nrows), :][:, 0:ncols]

    x = src_ref[...]                                                    # [S, L]

    # ---- embedding_layer: Linear(seq_length -> num_features) ----
    emb_w = wsl(R_EMB_W, L, D)
    emb_b = wsl(R_EMB_B, 1, D)
    emb = jnp.dot(x, emb_w, preferred_element_type=f32) + emb_b         # [S, D]

    # ---- TransformerEncoderLayer (post-norm) : fused-QKV multi-head self-attention ----
    qkv_w = wsl(R_QKV_W, D, 3 * D)                                      # [D, 3D]
    qkv_b = wsl(R_QKV_B, 1, 3 * D)                                      # [1, 3D]
    qkv = jnp.dot(emb, qkv_w, preferred_element_type=f32) + qkv_b       # [S, 3D]
    q = qkv[:, 0:D]
    k = qkv[:, D:2 * D]
    v = qkv[:, 2 * D:3 * D]

    wo = wsl(R_WO, D, D)                                                # [D, D]
    bo = wsl(R_BO, 1, D)

    kT = k.T                                                            # [D, S] (single transpose)
    scale = 1.0 / math.sqrt(HEAD_DIM)
    attn = jnp.zeros((S, D), f32)
    for h in range(NUM_HEADS):
        lo, hi = h * HEAD_DIM, (h + 1) * HEAD_DIM
        s_h = jnp.dot(q[:, lo:hi], kT[lo:hi, :], preferred_element_type=f32) * scale   # [S, S]
        s_h = s_h - jnp.max(s_h, axis=-1, keepdims=True)
        p = jnp.exp(s_h)
        p = p * pl.reciprocal(jnp.sum(p, axis=-1, keepdims=True), approx=True)
        head = jnp.dot(p, v[:, lo:hi], preferred_element_type=f32)                     # [S, Dh]
        # accumulate the output projection per head (no lane-axis concat)
        attn = attn + jnp.dot(head, wo[lo:hi, :], preferred_element_type=f32)          # [S, D]
    attn = attn + bo

    # residual + LayerNorm 1 (attention dropout -> identity in eval)
    ln1_g = wsl(R_LN1_G, 1, D)
    ln1_b = wsl(R_LN1_B, 1, D)
    x1 = _layernorm(emb + attn, ln1_g, ln1_b)                           # [S, D]

    # feed-forward: Linear -> ReLU -> Linear, bf16 weights, f32 accumulate
    ff1_w = ff1_ref[pl.ds(0, D), :]                                     # [D, F]  bf16
    ff1_b = ff1_ref[pl.ds(D, 1), :].astype(f32)                         # [1, F]
    h1 = jnp.dot(x1.astype(bf16), ff1_w, preferred_element_type=f32) + ff1_b
    h1 = jnp.maximum(h1, 0.0)                                           # [S, F] f32
    ff2_b = wsl(R_FF2_B, 1, D)
    h2 = jnp.dot(h1.astype(bf16), ff2_ref[...], preferred_element_type=f32) + ff2_b    # [S, D]

    # residual + LayerNorm 2
    ln2_g = wsl(R_LN2_G, 1, D)
    ln2_b = wsl(R_LN2_B, 1, D)
    x2 = _layernorm(x1 + h2, ln2_g, ln2_b)                              # [S, D]

    # ---- fc1 on the flattened encoder output [1, S*D], then SiLU ----
    # fc1_w was rearranged wrapper-side to W_wide[d, s*D + e] = W[s*D + d, e], so one
    # [S,D]@[D,S*D] matmul produces every per-sequence partial product; the flatten is
    # then the sum of the diagonal [1,D] blocks (static sublane+lane slices, VPU adds).
    fc1_w = wsl(R_FC1_W, D, S * D)                                      # [D, S*D]
    part = jnp.dot(x2, fc1_w, preferred_element_type=f32)               # [S, S*D]
    acc = wsl(R_FC1_B, 1, D)                                            # [1, D]
    for si in range(S):
        acc = acc + part[si:si + 1, si * D:(si + 1) * D]
    y = _silu(acc)                                                      # [1, D]

    # TODO(synk): self.decoder / get_tgt_mask branch skipped -- `self.decoder` is never
    # defined in the reference __init__, so `tgt` cannot influence the output.

    # ---- fc2 -> SiLU -> fc3 (dropouts -> identity in eval) ----
    fc2_w = wsl(R_FC2_W, D, D // 2)
    fc2_b = wsl(R_FC2_B, 1, D // 2)
    y2 = _silu(jnp.dot(y, fc2_w, preferred_element_type=f32) + fc2_b)   # [1, D//2]

    fc3_w = wsl(R_FC3_W, D // 2, L)
    fc3_b = wsl(R_FC3_B, 1, L)
    out = jnp.dot(y2, fc3_w, preferred_element_type=f32) + fc3_b        # [1, L]
    out_ref[...] = out.astype(out_ref.dtype)


def init_params(key):
    """Deterministic synthetic parameters, packed into 3 arrays (weights are [in, out])."""
    ks = jax.random.split(key, 16)

    def w(k, shape, scale=0.05):
        return (scale * jax.random.normal(k, shape)).astype(jnp.float32)

    emb_w, emb_b = w(ks[0], (L, D)), w(ks[1], (1, D))
    wq, bq = w(ks[2], (D, D)), w(ks[3], (1, D))
    wk, bk = w(ks[4], (D, D)), w(ks[5], (1, D))
    wv, bv = w(ks[6], (D, D)), w(ks[7], (1, D))
    wo, bo = w(ks[8], (D, D)), w(ks[9], (1, D))
    ln1_g, ln1_b = jnp.ones((1, D), jnp.float32), jnp.zeros((1, D), jnp.float32)
    ff1_w, ff1_b = w(ks[10], (D, F)), w(ks[11], (1, F))
    ff2_w, ff2_b = w(ks[12], (F, D)), w(ks[13], (1, D))
    ln2_g, ln2_b = jnp.ones((1, D), jnp.float32), jnp.zeros((1, D), jnp.float32)
    fc1_w, fc1_b = w(ks[14], (S * D, D)), jnp.zeros((1, D), jnp.float32)
    fc2_w, fc2_b = w(ks[15], (D, D // 2)), jnp.zeros((1, D // 2), jnp.float32)
    fc3_w, fc3_b = w(jax.random.fold_in(key, 99), (D // 2, L)), jnp.zeros((1, L), jnp.float32)

    # ---- pack small f32 weights / biases / LN params into one slab (1 DMA) ----
    qkv_w = jnp.concatenate([wq, wk, wv], axis=1)                       # [D, 3D]
    qkv_b = jnp.concatenate([bq, bk, bv], axis=1)                       # [1, 3D]
    # rearrange fc1 weight [S*D, D] -> W_wide [D, S*D] with W_wide[d, s*D+e] = W[s*D+d, e]
    fc1_wide = fc1_w.reshape(S, D, D).transpose(1, 0, 2).reshape(D, S * D)

    slab = jnp.zeros((SLAB_ROWS, SLAB_W), jnp.float32)

    def put(s, row, arr):
        return s.at[row:row + arr.shape[0], 0:arr.shape[1]].set(arr)

    slab = put(slab, R_EMB_W, emb_w)
    slab = put(slab, R_QKV_W, qkv_w)
    slab = put(slab, R_WO, wo)
    slab = put(slab, R_FC1_W, fc1_wide)
    slab = put(slab, R_FC2_W, fc2_w)
    slab = put(slab, R_FC3_W, fc3_w)
    slab = put(slab, R_EMB_B, emb_b)
    slab = put(slab, R_QKV_B, qkv_b)
    slab = put(slab, R_BO, bo)
    slab = put(slab, R_LN1_G, ln1_g)
    slab = put(slab, R_LN1_B, ln1_b)
    slab = put(slab, R_FF2_B, ff2_b)
    slab = put(slab, R_LN2_G, ln2_g)
    slab = put(slab, R_LN2_B, ln2_b)
    slab = put(slab, R_FC1_B, fc1_b)
    slab = put(slab, R_FC2_B, fc2_b)
    slab = put(slab, R_FC3_B, fc3_b)

    # ---- FFN weights in bf16 (halves the dominant HBM traffic); bias packed in ----
    ff1_packed = jnp.zeros((FF1_ROWS, F), jnp.bfloat16)
    ff1_packed = ff1_packed.at[0:D, :].set(ff1_w.astype(jnp.bfloat16))
    ff1_packed = ff1_packed.at[D:D + 1, :].set(ff1_b.astype(jnp.bfloat16))
    ff2_bf16 = ff2_w.astype(jnp.bfloat16)                               # [F, D]

    return slab, ff1_packed, ff2_bf16


@jax.jit
def transformer_forward(tgt, src, weight_slab, ff1_packed, ff2_w_bf16):
    # `tgt` unused (decoder branch unreproducible, see TODO in the kernel).  Shapes are
    # tiny, so the whole forward runs as a single Pallas invocation with every operand
    # resident in VMEM (no grid tiling needed); only 4 input DMAs total.
    del tgt
    return pl.pallas_call(
        transformer_kernel,
        out_shape=jax.ShapeDtypeStruct((1, SEQ_LENGTH), DTYPE),
        in_specs=[pl.BlockSpec(memory_space=pltpu.MemorySpace.VMEM)] * 4,
        out_specs=pl.BlockSpec(memory_space=pltpu.MemorySpace.VMEM),
    )(src, weight_slab, ff1_packed, ff2_w_bf16)


if __name__ == "__main__":
    key = jax.random.PRNGKey(0)
    k_src, k_tgt, k_par = jax.random.split(key, 3)

    src = jax.random.normal(k_src, (NUM_SEQS, SEQ_LENGTH), dtype=DTYPE)
    tgt = jax.random.normal(k_tgt, (NUM_SEQS, SEQ_LENGTH), dtype=DTYPE)
    weight_slab, ff1_packed, ff2_w_bf16 = init_params(k_par)

    out = transformer_forward(tgt, src, weight_slab, ff1_packed, ff2_w_bf16)
    out = jax.block_until_ready(out)

    assert out.shape == (1, SEQ_LENGTH), out.shape
    assert out.dtype == DTYPE
    assert bool(jnp.all(jnp.isfinite(out)))
    print("KERNEL_OK")
</pallas_src>

<mosaic_0001>
module attributes {stable_mosaic.version = 11 : i64} {
  func.func @transformer_kernel(%arg0: memref<8x16xf32, #tpu.memory_space<vmem>>, %arg1: memref<176x256xf32, #tpu.memory_space<vmem>>, %arg2: memref<48x2048xbf16, #tpu.memory_space<vmem>>, %arg3: memref<2048x32xbf16, #tpu.memory_space<vmem>>, %arg4: memref<1x16xf32, #tpu.memory_space<vmem>>) attributes {dimension_semantics = [], scalar_prefetch = 0 : i64, scratch_operands = 0 : i64, tpu.core_type = #tpu.core_type<tc>} {
    %c0 = arith.constant 0 : index
    %c0_0 = arith.constant 0 : index
    %0 = vector.load %arg0[%c0, %c0_0] : memref<8x16xf32, #tpu.memory_space<vmem>>, vector<8x16xf32>
    %c0_1 = arith.constant 0 : index
    %c0_2 = arith.constant 0 : index
    %1 = vector.load %arg1[%c0_1, %c0_2] : memref<176x256xf32, #tpu.memory_space<vmem>>, vector<16x256xf32>
    %2 = vector.extract_strided_slice %1 {offsets = [0, 0], sizes = [16, 32], strides = [1, 1]} : vector<16x256xf32> to vector<16x32xf32>
    %c160 = arith.constant 160 : index
    %c0_3 = arith.constant 0 : index
    %3 = vector.load %arg1[%c160, %c0_3] : memref<176x256xf32, #tpu.memory_space<vmem>>, vector<1x256xf32>
    %4 = vector.extract_strided_slice %3 {offsets = [0, 0], sizes = [1, 32], strides = [1, 1]} : vector<1x256xf32> to vector<1x32xf32>
    %cst = arith.constant dense<0.000000e+00> : vector<8x32xf32>
    %5 = tpu.matmul %0, %2, %cst {dimension_numbers = #tpu.dot_dimension_numbers<[1], [0], [0], [1], [0, 0, 1, 1], [], []>} : vector<8x16xf32>, vector<16x32xf32>, vector<8x32xf32> -> vector<8x32xf32>
    %6 = vector.broadcast %4 : vector<1x32xf32> to vector<8x32xf32>
    %7 = arith.addf %5, %6 : vector<8x32xf32>
    %c16 = arith.constant 16 : index
    %c0_4 = arith.constant 0 : index
    %8 = vector.load %arg1[%c16, %c0_4] : memref<176x256xf32, #tpu.memory_space<vmem>>, vector<32x256xf32>
    %9 = vector.extract_strided_slice %8 {offsets = [0, 0], sizes = [32, 96], strides = [1, 1]} : vector<32x256xf32> to vector<32x96xf32>
    %c161 = arith.constant 161 : index
    %c0_5 = arith.constant 0 : index
    %10 = vector.load %arg1[%c161, %c0_5] : memref<176x256xf32, #tpu.memory_space<vmem>>, vector<1x256xf32>
    %11 = vector.extract_strided_slice %10 {offsets = [0, 0], sizes = [1, 96], strides = [1, 1]} : vector<1x256xf32> to vector<1x96xf32>
    %cst_6 = arith.constant dense<0.000000e+00> : vector<8x96xf32>
    %12 = tpu.matmul %7, %9, %cst_6 {dimension_numbers = #tpu.dot_dimension_numbers<[1], [0], [0], [1], [0, 0, 1, 1], [], []>} : vector<8x32xf32>, vector<32x96xf32>, vector<8x96xf32> -> vector<8x96xf32>
    %13 = vector.broadcast %11 : vector<1x96xf32> to vector<8x96xf32>
    %14 = arith.addf %12, %13 : vector<8x96xf32>
    %15 = vector.extract_strided_slice %14 {offsets = [0, 0], sizes = [8, 32], strides = [1, 1]} : vector<8x96xf32> to vector<8x32xf32>
    %16 = vector.extract_strided_slice %14 {offsets = [0, 32], sizes = [8, 32], strides = [1, 1]} : vector<8x96xf32> to vector<8x32xf32>
    %17 = vector.extract_strided_slice %14 {offsets = [0, 64], sizes = [8, 32], strides = [1, 1]} : vector<8x96xf32> to vector<8x32xf32>
    %c48 = arith.constant 48 : index
    %c0_7 = arith.constant 0 : index
    %18 = vector.load %arg1[%c48, %c0_7] : memref<176x256xf32, #tpu.memory_space<vmem>>, vector<32x256xf32>
    %19 = vector.extract_strided_slice %18 {offsets = [0, 0], sizes = [32, 32], strides = [1, 1]} : vector<32x256xf32> to vector<32x32xf32>
    %c162 = arith.constant 162 : index
    %c0_8 = arith.constant 0 : index
    %20 = vector.load %arg1[%c162, %c0_8] : memref<176x256xf32, #tpu.memory_space<vmem>>, vector<1x256xf32>
    %21 = vector.extract_strided_slice %20 {offsets = [0, 0], sizes = [1, 32], strides = [1, 1]} : vector<1x256xf32> to vector<1x32xf32>
    %22 = tpu.transpose %16, [1, 0] : vector<8x32xf32> -> vector<32x8xf32>
    %cst_9 = arith.constant 0.000000e+00 : f32
    %23 = vector.broadcast %cst_9 : f32 to vector<8x32xf32>
    %24 = vector.extract_strided_slice %15 {offsets = [0, 0], sizes = [8, 8], strides = [1, 1]} : vector<8x32xf32> to vector<8x8xf32>
    %25 = vector.extract_strided_slice %22 {offsets = [0, 0], sizes = [8, 8], strides = [1, 1]} : vector<32x8xf32> to vector<8x8xf32>
    %cst_10 = arith.constant dense<0.000000e+00> : vector<8x8xf32>
    %26 = tpu.matmul %24, %25, %cst_10 {dimension_numbers = #tpu.dot_dimension_numbers<[1], [0], [0], [1], [0, 0, 1, 1], [], []>} : vector<8x8xf32>, vector<8x8xf32>, vector<8x8xf32> -> vector<8x8xf32>
    %cst_11 = arith.constant 0.353553385 : f32
    %27 = vector.broadcast %cst_11 : f32 to vector<8x8xf32>
    %28 = arith.mulf %26, %27 : vector<8x8xf32>
    %cst_12 = arith.constant dense<0xFF800000> : vector<8xf32>
    %29 = vector.multi_reduction <maximumf>, %28, %cst_12 [1] : vector<8x8xf32> to vector<8xf32>
    %30 = vector.shape_cast %29 : vector<8xf32> to vector<8x1xf32>
    %31 = vector.broadcast %30 : vector<8x1xf32> to vector<8x8xf32>
    %32 = arith.subf %28, %31 : vector<8x8xf32>
    %33 = math.exp %32 : vector<8x8xf32>
    %cst_13 = arith.constant dense<0.000000e+00> : vector<8xf32>
    %34 = vector.multi_reduction <add>, %33, %cst_13 [1] : vector<8x8xf32> to vector<8xf32>
    %35 = vector.shape_cast %34 : vector<8xf32> to vector<8x1xf32>
    %36 = tpu.reciprocal %35 {approx = true} : vector<8x1xf32> -> vector<8x1xf32>
    %37 = vector.broadcast %36 : vector<8x1xf32> to vector<8x8xf32>
    %38 = arith.mulf %33, %37 : vector<8x8xf32>
    %39 = vector.extract_strided_slice %17 {offsets = [0, 0], sizes = [8, 8], strides = [1, 1]} : vector<8x32xf32> to vector<8x8xf32>
    %cst_14 = arith.constant dense<0.000000e+00> : vector<8x8xf32>
    %40 = tpu.matmul %38, %39, %cst_14 {dimension_numbers = #tpu.dot_dimension_numbers<[1], [0], [0], [1], [0, 0, 1, 1], [], []>} : vector<8x8xf32>, vector<8x8xf32>, vector<8x8xf32> -> vector<8x8xf32>
    %41 = vector.extract_strided_slice %19 {offsets = [0, 0], sizes = [8, 32], strides = [1, 1]} : vector<32x32xf32> to vector<8x32xf32>
    %cst_15 = arith.constant dense<0.000000e+00> : vector<8x32xf32>
    %42 = tpu.matmul %40, %41, %cst_15 {dimension_numbers = #tpu.dot_dimension_numbers<[1], [0], [0], [1], [0, 0, 1, 1], [], []>} : vector<8x8xf32>, vector<8x32xf32>, vector<8x32xf32> -> vector<8x32xf32>
    %43 = arith.addf %23, %42 : vector<8x32xf32>
    %44 = vector.extract_strided_slice %15 {offsets = [0, 8], sizes = [8, 8], strides = [1, 1]} : vector<8x32xf32> to vector<8x8xf32>
    %45 = vector.extract_strided_slice %22 {offsets = [8, 0], sizes = [8, 8], strides = [1, 1]} : vector<32x8xf32> to vector<8x8xf32>
    %cst_16 = arith.constant dense<0.000000e+00> : vector<8x8xf32>
    %46 = tpu.matmul %44, %45, %cst_16 {dimension_numbers = #tpu.dot_dimension_numbers<[1], [0], [0], [1], [0, 0, 1, 1], [], []>} : vector<8x8xf32>, vector<8x8xf32>, vector<8x8xf32> -> vector<8x8xf32>
    %cst_17 = arith.constant 0.353553385 : f32
    %47 = vector.broadcast %cst_17 : f32 to vector<8x8xf32>
    %48 = arith.mulf %46, %47 : vector<8x8xf32>
    %cst_18 = arith.constant dense<0xFF800000> : vector<8xf32>
    %49 = vector.multi_reduction <maximumf>, %48, %cst_18 [1] : vector<8x8xf32> to vector<8xf32>
    %50 = vector.shape_cast %49 : vector<8xf32> to vector<8x1xf32>
    %51 = vector.broadcast %50 : vector<8x1xf32> to vector<8x8xf32>
    %52 = arith.subf %48, %51 : vector<8x8xf32>
    %53 = math.exp %52 : vector<8x8xf32>
    %cst_19 = arith.constant dense<0.000000e+00> : vector<8xf32>
    %54 = vector.multi_reduction <add>, %53, %cst_19 [1] : vector<8x8xf32> to vector<8xf32>
    %55 = vector.shape_cast %54 : vector<8xf32> to vector<8x1xf32>
    %56 = tpu.reciprocal %55 {approx = true} : vector<8x1xf32> -> vector<8x1xf32>
    %57 = vector.broadcast %56 : vector<8x1xf32> to vector<8x8xf32>
    %58 = arith.mulf %53, %57 : vector<8x8xf32>
    %59 = vector.extract_strided_slice %17 {offsets = [0, 8], sizes = [8, 8], strides = [1, 1]} : vector<8x32xf32> to vector<8x8xf32>
    %cst_20 = arith.constant dense<0.000000e+00> : vector<8x8xf32>
    %60 = tpu.matmul %58, %59, %cst_20 {dimension_numbers = #tpu.dot_dimension_numbers<[1], [0], [0], [1], [0, 0, 1, 1], [], []>} : vector<8x8xf32>, vector<8x8xf32>, vector<8x8xf32> -> vector<8x8xf32>
    %61 = vector.extract_strided_slice %19 {offsets = [8, 0], sizes = [8, 32], strides = [1, 1]} : vector<32x32xf32> to vector<8x32xf32>
    %cst_21 = arith.constant dense<0.000000e+00> : vector<8x32xf32>
    %62 = tpu.matmul %60, %61, %cst_21 {dimension_numbers = #tpu.dot_dimension_numbers<[1], [0], [0], [1], [0, 0, 1, 1], [], []>} : vector<8x8xf32>, vector<8x32xf32>, vector<8x32xf32> -> vector<8x32xf32>
    %63 = arith.addf %43, %62 : vector<8x32xf32>
    %64 = vector.extract_strided_slice %15 {offsets = [0, 16], sizes = [8, 8], strides = [1, 1]} : vector<8x32xf32> to vector<8x8xf32>
    %65 = vector.extract_strided_slice %22 {offsets = [16, 0], sizes = [8, 8], strides = [1, 1]} : vector<32x8xf32> to vector<8x8xf32>
    %cst_22 = arith.constant dense<0.000000e+00> : vector<8x8xf32>
    %66 = tpu.matmul %64, %65, %cst_22 {dimension_numbers = #tpu.dot_dimension_numbers<[1], [0], [0], [1], [0, 0, 1, 1], [], []>} : vector<8x8xf32>, vector<8x8xf32>, vector<8x8xf32> -> vector<8x8xf32>
    %cst_23 = arith.constant 0.353553385 : f32
    %67 = vector.broadcast %cst_23 : f32 to vector<8x8xf32>
    %68 = arith.mulf %66, %67 : vector<8x8xf32>
    %cst_24 = arith.constant dense<0xFF800000> : vector<8xf32>
    %69 = vector.multi_reduction <maximumf>, %68, %cst_24 [1] : vector<8x8xf32> to vector<8xf32>
    %70 = vector.shape_cast %69 : vector<8xf32> to vector<8x1xf32>
    %71 = vector.broadcast %70 : vector<8x1xf32> to vector<8x8xf32>
    %72 = arith.subf %68, %71 : vector<8x8xf32>
    %73 = math.exp %72 : vector<8x8xf32>
    %cst_25 = arith.constant dense<0.000000e+00> : vector<8xf32>
    %74 = vector.multi_reduction <add>, %73, %cst_25 [1] : vector<8x8xf32> to vector<8xf32>
    %75 = vector.shape_cast %74 : vector<8xf32> to vector<8x1xf32>
    %76 = tpu.reciprocal %75 {approx = true} : vector<8x1xf32> -> vector<8x1xf32>
    %77 = vector.broadcast %76 : vector<8x1xf32> to vector<8x8xf32>
    %78 = arith.mulf %73, %77 : vector<8x8xf32>
    %79 = vector.extract_strided_slice %17 {offsets = [0, 16], sizes = [8, 8], strides = [1, 1]} : vector<8x32xf32> to vector<8x8xf32>
    %cst_26 = arith.constant dense<0.000000e+00> : vector<8x8xf32>
    %80 = tpu.matmul %78, %79, %cst_26 {dimension_numbers = #tpu.dot_dimension_numbers<[1], [0], [0], [1], [0, 0, 1, 1], [], []>} : vector<8x8xf32>, vector<8x8xf32>, vector<8x8xf32> -> vector<8x8xf32>
    %81 = vector.extract_strided_slice %19 {offsets = [16, 0], sizes = [8, 32], strides = [1, 1]} : vector<32x32xf32> to vector<8x32xf32>
    %cst_27 = arith.constant dense<0.000000e+00> : vector<8x32xf32>
    %82 = tpu.matmul %80, %81, %cst_27 {dimension_numbers = #tpu.dot_dimension_numbers<[1], [0], [0], [1], [0, 0, 1, 1], [], []>} : vector<8x8xf32>, vector<8x32xf32>, vector<8x32xf32> -> vector<8x32xf32>
    %83 = arith.addf %63, %82 : vector<8x32xf32>
    %84 = vector.extract_strided_slice %15 {offsets = [0, 24], sizes = [8, 8], strides = [1, 1]} : vector<8x32xf32> to vector<8x8xf32>
    %85 = vector.extract_strided_slice %22 {offsets = [24, 0], sizes = [8, 8], strides = [1, 1]} : vector<32x8xf32> to vector<8x8xf32>
    %cst_28 = arith.constant dense<0.000000e+00> : vector<8x8xf32>
    %86 = tpu.matmul %84, %85, %cst_28 {dimension_numbers = #tpu.dot_dimension_numbers<[1], [0], [0], [1], [0, 0, 1, 1], [], []>} : vector<8x8xf32>, vector<8x8xf32>, vector<8x8xf32> -> vector<8x8xf32>
    %cst_29 = arith.constant 0.353553385 : f32
    %87 = vector.broadcast %cst_29 : f32 to vector<8x8xf32>
    %88 = arith.mulf %86, %87 : vector<8x8xf32>
    %cst_30 = arith.constant dense<0xFF800000> : vector<8xf32>
    %89 = vector.multi_reduction <maximumf>, %88, %cst_30 [1] : vector<8x8xf32> to vector<8xf32>
    %90 = vector.shape_cast %89 : vector<8xf32> to vector<8x1xf32>
    %91 = vector.broadcast %90 : vector<8x1xf32> to vector<8x8xf32>
    %92 = arith.subf %88, %91 : vector<8x8xf32>
    %93 = math.exp %92 : vector<8x8xf32>
    %cst_31 = arith.constant dense<0.000000e+00> : vector<8xf32>
    %94 = vector.multi_reduction <add>, %93, %cst_31 [1] : vector<8x8xf32> to vector<8xf32>
    %95 = vector.shape_cast %94 : vector<8xf32> to vector<8x1xf32>
    %96 = tpu.reciprocal %95 {approx = true} : vector<8x1xf32> -> vector<8x1xf32>
    %97 = vector.broadcast %96 : vector<8x1xf32> to vector<8x8xf32>
    %98 = arith.mulf %93, %97 : vector<8x8xf32>
    %99 = vector.extract_strided_slice %17 {offsets = [0, 24], sizes = [8, 8], strides = [1, 1]} : vector<8x32xf32> to vector<8x8xf32>
    %cst_32 = arith.constant dense<0.000000e+00> : vector<8x8xf32>
    %100 = tpu.matmul %98, %99, %cst_32 {dimension_numbers = #tpu.dot_dimension_numbers<[1], [0], [0], [1], [0, 0, 1, 1], [], []>} : vector<8x8xf32>, vector<8x8xf32>, vector<8x8xf32> -> vector<8x8xf32>
    %101 = vector.extract_strided_slice %19 {offsets = [24, 0], sizes = [8, 32], strides = [1, 1]} : vector<32x32xf32> to vector<8x32xf32>
    %cst_33 = arith.constant dense<0.000000e+00> : vector<8x32xf32>
    %102 = tpu.matmul %100, %101, %cst_33 {dimension_numbers = #tpu.dot_dimension_numbers<[1], [0], [0], [1], [0, 0, 1, 1], [], []>} : vector<8x8xf32>, vector<8x32xf32>, vector<8x32xf32> -> vector<8x32xf32>
    %103 = arith.addf %83, %102 : vector<8x32xf32>
    %104 = vector.broadcast %21 : vector<1x32xf32> to vector<8x32xf32>
    %105 = arith.addf %103, %104 : vector<8x32xf32>
    %c163 = arith.constant 163 : index
    %c0_34 = arith.constant 0 : index
    %106 = vector.load %arg1[%c163, %c0_34] : memref<176x256xf32, #tpu.memory_space<vmem>>, vector<1x256xf32>
    %107 = vector.extract_strided_slice %106 {offsets = [0, 0], sizes = [1, 32], strides = [1, 1]} : vector<1x256xf32> to vector<1x32xf32>
    %c164 = arith.constant 164 : index
    %c0_35 = arith.constant 0 : index
    %108 = vector.load %arg1[%c164, %c0_35] : memref<176x256xf32, #tpu.memory_space<vmem>>, vector<1x256xf32>
    %109 = vector.extract_strided_slice %108 {offsets = [0, 0], sizes = [1, 32], strides = [1, 1]} : vector<1x256xf32> to vector<1x32xf32>
    %110 = arith.addf %7, %105 : vector<8x32xf32>
    %cst_36 = arith.constant dense<0.000000e+00> : vector<8xf32>
    %111 = vector.multi_reduction <add>, %110, %cst_36 [1] : vector<8x32xf32> to vector<8xf32>
    %112 = vector.shape_cast %111 : vector<8xf32> to vector<8x1xf32>
    %cst_37 = arith.constant 3.200000e+01 : f32
    %113 = vector.broadcast %cst_37 : f32 to vector<8x1xf32>
    %114 = arith.divf %112, %113 : vector<8x1xf32>
    %115 = vector.broadcast %114 : vector<8x1xf32> to vector<8x32xf32>
    %116 = arith.subf %110, %115 : vector<8x32xf32>
    %117 = vector.broadcast %114 : vector<8x1xf32> to vector<8x32xf32>
    %118 = arith.subf %110, %117 : vector<8x32xf32>
    %119 = arith.mulf %116, %118 : vector<8x32xf32>
    %cst_38 = arith.constant dense<0.000000e+00> : vector<8xf32>
    %120 = vector.multi_reduction <add>, %119, %cst_38 [1] : vector<8x32xf32> to vector<8xf32>
    %121 = vector.shape_cast %120 : vector<8xf32> to vector<8x1xf32>
    %cst_39 = arith.constant 3.200000e+01 : f32
    %122 = vector.broadcast %cst_39 : f32 to vector<8x1xf32>
    %123 = arith.divf %121, %122 : vector<8x1xf32>
    %cst_40 = arith.constant 9.99999974E-6 : f32
    %124 = vector.broadcast %cst_40 : f32 to vector<8x1xf32>
    %125 = arith.addf %123, %124 : vector<8x1xf32>
    %126 = math.rsqrt %125 : vector<8x1xf32>
    %127 = vector.broadcast %114 : vector<8x1xf32> to vector<8x32xf32>
    %128 = arith.subf %110, %127 : vector<8x32xf32>
    %129 = vector.broadcast %126 : vector<8x1xf32> to vector<8x32xf32>
    %130 = arith.mulf %128, %129 : vector<8x32xf32>
    %131 = vector.broadcast %107 : vector<1x32xf32> to vector<8x32xf32>
    %132 = arith.mulf %130, %131 : vector<8x32xf32>
    %133 = vector.broadcast %109 : vector<1x32xf32> to vector<8x32xf32>
    %134 = arith.addf %132, %133 : vector<8x32xf32>
    %c0_41 = arith.constant 0 : index
    %c0_42 = arith.constant 0 : index
    %135 = vector.load %arg2[%c0_41, %c0_42] : memref<48x2048xbf16, #tpu.memory_space<vmem>>, vector<32x2048xbf16>
    %c32 = arith.constant 32 : index
    %c0_43 = arith.constant 0 : index
    %136 = vector.load %arg2[%c32, %c0_43] : memref<48x2048xbf16, #tpu.memory_space<vmem>>, vector<1x2048xbf16>
    %137 = arith.extf %136 : vector<1x2048xbf16> to vector<1x2048xf32>
    %138 = arith.truncf %134 : vector<8x32xf32> to vector<8x32xbf16>
    %cst_44 = arith.constant dense<0.000000e+00> : vector<8x2048xf32>
    %139 = tpu.matmul %138, %135, %cst_44 {dimension_numbers = #tpu.dot_dimension_numbers<[1], [0], [0], [1], [0, 0, 1, 1], [], []>} : vector<8x32xbf16>, vector<32x2048xbf16>, vector<8x2048xf32> -> vector<8x2048xf32>
    %140 = vector.broadcast %137 : vector<1x2048xf32> to vector<8x2048xf32>
    %141 = arith.addf %139, %140 : vector<8x2048xf32>
    %cst_45 = arith.constant 0.000000e+00 : f32
    %142 = vector.broadcast %cst_45 : f32 to vector<8x2048xf32>
    %143 = arith.maximumf %141, %142 : vector<8x2048xf32>
    %c165 = arith.constant 165 : index
    %c0_46 = arith.constant 0 : index
    %144 = vector.load %arg1[%c165, %c0_46] : memref<176x256xf32, #tpu.memory_space<vmem>>, vector<1x256xf32>
    %145 = vector.extract_strided_slice %144 {offsets = [0, 0], sizes = [1, 32], strides = [1, 1]} : vector<1x256xf32> to vector<1x32xf32>
    %146 = arith.truncf %143 : vector<8x2048xf32> to vector<8x2048xbf16>
    %c0_47 = arith.constant 0 : index
    %c0_48 = arith.constant 0 : index
    %147 = vector.load %arg3[%c0_47, %c0_48] : memref<2048x32xbf16, #tpu.memory_space<vmem>>, vector<2048x32xbf16>
    %cst_49 = arith.constant dense<0.000000e+00> : vector<8x32xf32>
    %148 = tpu.matmul %146, %147, %cst_49 {dimension_numbers = #tpu.dot_dimension_numbers<[1], [0], [0], [1], [0, 0, 1, 1], [], []>} : vector<8x2048xbf16>, vector<2048x32xbf16>, vector<8x32xf32> -> vector<8x32xf32>
    %149 = vector.broadcast %145 : vector<1x32xf32> to vector<8x32xf32>
    %150 = arith.addf %148, %149 : vector<8x32xf32>
    %c166 = arith.constant 166 : index
    %c0_50 = arith.constant 0 : index
    %151 = vector.load %arg1[%c166, %c0_50] : memref<176x256xf32, #tpu.memory_space<vmem>>, vector<1x256xf32>
    %152 = vector.extract_strided_slice %151 {offsets = [0, 0], sizes = [1, 32], strides = [1, 1]} : vector<1x256xf32> to vector<1x32xf32>
    %c167 = arith.constant 167 : index
    %c0_51 = arith.constant 0 : index
    %153 = vector.load %arg1[%c167, %c0_51] : memref<176x256xf32, #tpu.memory_space<vmem>>, vector<1x256xf32>
    %154 = vector.extract_strided_slice %153 {offsets = [0, 0], sizes = [1, 32], strides = [1, 1]} : vector<1x256xf32> to vector<1x32xf32>
    %155 = arith.addf %134, %150 : vector<8x32xf32>
    %cst_52 = arith.constant dense<0.000000e+00> : vector<8xf32>
    %156 = vector.multi_reduction <add>, %155, %cst_52 [1] : vector<8x32xf32> to vector<8xf32>
    %157 = vector.shape_cast %156 : vector<8xf32> to vector<8x1xf32>
    %cst_53 = arith.constant 3.200000e+01 : f32
    %158 = vector.broadcast %cst_53 : f32 to vector<8x1xf32>
    %159 = arith.divf %157, %158 : vector<8x1xf32>
    %160 = vector.broadcast %159 : vector<8x1xf32> to vector<8x32xf32>
    %161 = arith.subf %155, %160 : vector<8x32xf32>
    %162 = vector.broadcast %159 : vector<8x1xf32> to vector<8x32xf32>
    %163 = arith.subf %155, %162 : vector<8x32xf32>
    %164 = arith.mulf %161, %163 : vector<8x32xf32>
    %cst_54 = arith.constant dense<0.000000e+00> : vector<8xf32>
    %165 = vector.multi_reduction <add>, %164, %cst_54 [1] : vector<8x32xf32> to vector<8xf32>
    %166 = vector.shape_cast %165 : vector<8xf32> to vector<8x1xf32>
    %cst_55 = arith.constant 3.200000e+01 : f32
    %167 = vector.broadcast %cst_55 : f32 to vector<8x1xf32>
    %168 = arith.divf %166, %167 : vector<8x1xf32>
    %cst_56 = arith.constant 9.99999974E-6 : f32
    %169 = vector.broadcast %cst_56 : f32 to vector<8x1xf32>
    %170 = arith.addf %168, %169 : vector<8x1xf32>
    %171 = math.rsqrt %170 : vector<8x1xf32>
    %172 = vector.broadcast %159 : vector<8x1xf32> to vector<8x32xf32>
    %173 = arith.subf %155, %172 : vector<8x32xf32>
    %174 = vector.broadcast %171 : vector<8x1xf32> to vector<8x32xf32>
    %175 = arith.mulf %173, %174 : vector<8x32xf32>
    %176 = vector.broadcast %152 : vector<1x32xf32> to vector<8x32xf32>
    %177 = arith.mulf %175, %176 : vector<8x32xf32>
    %178 = vector.broadcast %154 : vector<1x32xf32> to vector<8x32xf32>
    %179 = arith.addf %177, %178 : vector<8x32xf32>
    %c80 = arith.constant 80 : index
    %c0_57 = arith.constant 0 : index
    %180 = vector.load %arg1[%c80, %c0_57] : memref<176x256xf32, #tpu.memory_space<vmem>>, vector<32x256xf32>
    %cst_58 = arith.constant dense<0.000000e+00> : vector<8x256xf32>
    %181 = tpu.matmul %179, %180, %cst_58 {dimension_numbers = #tpu.dot_dimension_numbers<[1], [0], [0], [1], [0, 0, 1, 1], [], []>} : vector<8x32xf32>, vector<32x256xf32>, vector<8x256xf32> -> vector<8x256xf32>
    %c168 = arith.constant 168 : index
    %c0_59 = arith.constant 0 : index
    %182 = vector.load %arg1[%c168, %c0_59] : memref<176x256xf32, #tpu.memory_space<vmem>>, vector<1x256xf32>
    %183 = vector.extract_strided_slice %182 {offsets = [0, 0], sizes = [1, 32], strides = [1, 1]} : vector<1x256xf32> to vector<1x32xf32>
    %184 = vector.extract_strided_slice %181 {offsets = [0, 0], sizes = [1, 32], strides = [1, 1]} : vector<8x256xf32> to vector<1x32xf32>
    %185 = arith.addf %183, %184 : vector<1x32xf32>
    %186 = vector.extract_strided_slice %181 {offsets = [1, 32], sizes = [1, 32], strides = [1, 1]} : vector<8x256xf32> to vector<1x32xf32>
    %187 = arith.addf %185, %186 : vector<1x32xf32>
    %188 = vector.extract_strided_slice %181 {offsets = [2, 64], sizes = [1, 32], strides = [1, 1]} : vector<8x256xf32> to vector<1x32xf32>
    %189 = arith.addf %187, %188 : vector<1x32xf32>
    %190 = vector.extract_strided_slice %181 {offsets = [3, 96], sizes = [1, 32], strides = [1, 1]} : vector<8x256xf32> to vector<1x32xf32>
    %191 = arith.addf %189, %190 : vector<1x32xf32>
    %192 = vector.extract_strided_slice %181 {offsets = [4, 128], sizes = [1, 32], strides = [1, 1]} : vector<8x256xf32> to vector<1x32xf32>
    %193 = arith.addf %191, %192 : vector<1x32xf32>
    %194 = vector.extract_strided_slice %181 {offsets = [5, 160], sizes = [1, 32], strides = [1, 1]} : vector<8x256xf32> to vector<1x32xf32>
    %195 = arith.addf %193, %194 : vector<1x32xf32>
    %196 = vector.extract_strided_slice %181 {offsets = [6, 192], sizes = [1, 32], strides = [1, 1]} : vector<8x256xf32> to vector<1x32xf32>
    %197 = arith.addf %195, %196 : vector<1x32xf32>
    %198 = vector.extract_strided_slice %181 {offsets = [7, 224], sizes = [1, 32], strides = [1, 1]} : vector<8x256xf32> to vector<1x32xf32>
    %199 = arith.addf %197, %198 : vector<1x32xf32>
    %200 = arith.negf %199 : vector<1x32xf32>
    %201 = math.exp %200 : vector<1x32xf32>
    %cst_60 = arith.constant 1.000000e+00 : f32
    %202 = vector.broadcast %cst_60 : f32 to vector<1x32xf32>
    %203 = arith.addf %202, %201 : vector<1x32xf32>
    %204 = arith.divf %202, %203 : vector<1x32xf32>
    %205 = arith.mulf %199, %204 : vector<1x32xf32>
    %c112 = arith.constant 112 : index
    %c0_61 = arith.constant 0 : index
    %206 = vector.load %arg1[%c112, %c0_61] : memref<176x256xf32, #tpu.memory_space<vmem>>, vector<32x256xf32>
    %207 = vector.extract_strided_slice %206 {offsets = [0, 0], sizes = [32, 16], strides = [1, 1]} : vector<32x256xf32> to vector<32x16xf32>
    %c169 = arith.constant 169 : index
    %c0_62 = arith.constant 0 : index
    %208 = vector.load %arg1[%c169, %c0_62] : memref<176x256xf32, #tpu.memory_space<vmem>>, vector<1x256xf32>
    %209 = vector.extract_strided_slice %208 {offsets = [0, 0], sizes = [1, 16], strides = [1, 1]} : vector<1x256xf32> to vector<1x16xf32>
    %cst_63 = arith.constant dense<0.000000e+00> : vector<1x16xf32>
    %210 = tpu.matmul %205, %207, %cst_63 {dimension_numbers = #tpu.dot_dimension_numbers<[1], [0], [0], [1], [0, 0, 1, 1], [], []>} : vector<1x32xf32>, vector<32x16xf32>, vector<1x16xf32> -> vector<1x16xf32>
    %211 = arith.addf %210, %209 : vector<1x16xf32>
    %212 = arith.negf %211 : vector<1x16xf32>
    %213 = math.exp %212 : vector<1x16xf32>
    %cst_64 = arith.constant 1.000000e+00 : f32
    %214 = vector.broadcast %cst_64 : f32 to vector<1x16xf32>
    %215 = arith.addf %214, %213 : vector<1x16xf32>
    %216 = arith.divf %214, %215 : vector<1x16xf32>
    %217 = arith.mulf %211, %216 : vector<1x16xf32>
    %c144 = arith.constant 144 : index
    %c0_65 = arith.constant 0 : index
    %218 = vector.load %arg1[%c144, %c0_65] : memref<176x256xf32, #tpu.memory_space<vmem>>, vector<16x256xf32>
    %219 = vector.extract_strided_slice %218 {offsets = [0, 0], sizes = [16, 16], strides = [1, 1]} : vector<16x256xf32> to vector<16x16xf32>
    %c170 = arith.constant 170 : index
    %c0_66 = arith.constant 0 : index
    %220 = vector.load %arg1[%c170, %c0_66] : memref<176x256xf32, #tpu.memory_space<vmem>>, vector<1x256xf32>
    %221 = vector.extract_strided_slice %220 {offsets = [0, 0], sizes = [1, 16], strides = [1, 1]} : vector<1x256xf32> to vector<1x16xf32>
    %cst_67 = arith.constant dense<0.000000e+00> : vector<1x16xf32>
    %222 = tpu.matmul %217, %219, %cst_67 {dimension_numbers = #tpu.dot_dimension_numbers<[1], [0], [0], [1], [0, 0, 1, 1], [], []>} : vector<1x16xf32>, vector<16x16xf32>, vector<1x16xf32> -> vector<1x16xf32>
    %223 = arith.addf %222, %221 : vector<1x16xf32>
    %c0_68 = arith.constant 0 : index
    %c0_69 = arith.constant 0 : index
    %224 = vector.load %arg4[%c0_68, %c0_69] : memref<1x16xf32, #tpu.memory_space<vmem>>, vector<1x16xf32>
    tpu.vector_store %arg4[%c0_68, %c0_69], %223 {strides = array<i32>} : memref<1x16xf32, #tpu.memory_space<vmem>>, vector<1x16xf32>,
    return
  }
}

</mosaic_0001>

<bundles_post_ra>
// kernel: transformer_forward.1
= control target key start
LH: loop header
LB: loop body
LE: loop exit
PB: predicated region body
PF: predicated region fallthrough
CT: control target
= control target key end

     0   :  { %vm27_vm0 = vcmask 130048   ;;  %s4241_s0 = inlined_call_operand.vmem [shape: f32[8,16], index: 0, kind: input, shape index: {}]   ;;  %s4242_s1 = inlined_call_operand.vmem [shape: f32[176,256], index: 1, kind: input, shape index: {}]   ;;  %s4243_s2 = inlined_call_operand.vmem [shape: bf16[48,2048], index: 2, kind: input, shape index: {}]   ;;  %s4244_s3 = inlined_call_operand.vmem [shape: bf16[2048,32], index: 3, kind: input, shape index: {}]   ;;  %s4245_s4 = inlined_call_operand.hbm [shape: f32[1,16], index: 4, kind: output, shape index: {}]  }
   0x1   :  { %v21_v0 = vld [vmem:[%s4242_s1 + $0x10] sm:$0xff]  ;;  %v20_v1 = vld [vmem:[%s4242_s1] sm:$0xff] }
   0x2   :  { %45 = vmatpush.msra.mxu0 %v21_v0  ;;  %v19_v2 = vld [vmem:[%s4241_s0] sm:$0xff]  ;;  %v54_v3 = vld [vmem:[%s4242_s1 + $0x50] sm:$0xff] }
   0x3   :  { %v53_v4 = vld [vmem:[%s4242_s1 + $0x40] sm:$0xff]  ;;  %76 = vmatpush.msra.mxu1 %v54_v3 }
   0x4   :  { %9 = vsyncpa [#allocation3], 0  ;;  %46 = vmatpush.msra.mxu0 %v20_v1  ;;  %v52_v5 = vld [vmem:[%s4242_s1 + $0x30] sm:$0xff]  ;;  %v51_v6 = vld [vmem:[%s4242_s1 + $0x20] sm:$0xff]  ;;  %vm60_vm1 = vcmask 261120   ;;  %s3380_s6 = smov 88  }
   0x5   :  { %2460 = vmatmul.msk.f32.vlgmr.msra.gmra.mxu0 %vm27_vm0, %v19_v2  ;;  %77 = vmatpush.msra.mxu1 %v53_v4  ;;  %v2459_v7 = vld [vmem:[%s4242_s1 + $0x140] ss:$8 sm:$0x3]  ;;  %v2461_v11 = vld [vmem:[%s4242_s1 + $0x141] ss:$8 sm:$0x3] }
   0x6   :  { %v25_v8 = vperm.slane %v2459_v7, 0  ;;  %v58_v12 = vperm.slane %v2461_v11, 0  ;;  %s3381_s7 = smov 96   ;;  %s3382_s8 = smov 120   ;;  %v84_v15 = vld [vmem:[%s4242_s1 + $0x60] sm:$0xff]  ;;  %vm93_vm2 = vcmask 64512  }
   0x7   :  { %78 = vmatpush.msra.mxu1 %v52_v5  ;;  %s3383_s9 = smov 80   ;;  %s3384_s10 = smov 112   ;;  %v86_v11 = vld [vmem:[%s4242_s1 + $0x80] sm:$0xff] }
   0x8   :  { %s3385_s11 = smov 72   ;;  %s3386_s14 = smov 64  }
   0x9   :  { %79 = vmatpush.msra.mxu1 %v51_v6  ;;  %s3387_s15 = smov 104   ;;  %s3388_s16 = smov 48   ;;  %v85_v6 = vld [vmem:[%s4242_s1 + $0x70] sm:$0xff] }
   0xa   :  { %s3389_s17 = smov 56   ;;  %s3390_s18 = smov 40  }
   0xb   :  { %263 = vmatpush.msrb.mxu1 %v84_v15  ;;  %s2450_s19 = sshll.u32 %s4245_s4, 4  ;;  %s2451_s19 = int_to_ptr.hbm [resolvable:$true] %s2450_s19 }
  0x82   :  { %v48_v9 = vpop.f32.mrf.mxu0 }
  0x83   :  { %v3444_v10 = vadd.f32 %v48_v9, %v25_v8 }
  0x85   :  { %2462 = vmatmul.msk.f32.vlgmr.msra.gmra.mxu1 %vm60_vm1, %v3444_v10 }
 0x102   :  { %v81_v13 = vpop.f32.mrf.mxu1 }
 0x103   :  { %v3451_v14 = vadd.f32 %v81_v13, %v58_v12 }
 0x105   :  { %158 = vrot.lane.b32.xlu2 %v3451_v14, %s3380_s6  ;;  %91 = vrot.lane.b32.xlu0 %v3451_v14, %s3381_s7 }
 0x10d   :  { %156 = vrot.lane.b32.xlu2 %v3451_v14, %s3382_s8 }
 0x115   :  { %270 = vrot.lane.b32.xlu2 %v3451_v14, %s3383_s9 }
 0x11d   :  { %268 = vrot.lane.b32.xlu2 %v3451_v14, %s3384_s10 }
 0x125   :  { %360 = vrot.lane.b32.xlu2 %v3451_v14, %s3385_s11 }
 0x15f   :  { %v159_v16 = vpop.permute.xlu2 %158 }
 0x167   :  { %v157_v17 = vpop.permute.xlu2 %156 }
 0x16f   :  { %v271_v18 = vpop.permute.xlu2 %270 }
 0x177   :  { %v269_v19 = vpop.permute.xlu2 %268  ;;  %v92_v20 = vpop.permute.xlu0 %91 }
 0x178   :  { %2464 = vmatpush.xpose.msk.msra.mxu2 %vm93_vm2, %v92_v20 }
 0x17b   :  { %2465 = vmatmul.msk.f32.vlgmr.msra.gmra.mxu2 %vm93_vm2, %v3451_v14 }
 0x17c   :  { %240 = vmatpush.msrb.mxu2 %v85_v6  ;;  %v3177_v6 = vld [vmem:[%s4243_s2 + $0xd4] sm:$0xf0] }
 0x17e   :  { %352 = vmatpush.msra.mxu2 %v86_v11  ;;  %v2574_v11 = vld [vmem:[%s4243_s2 + $0xd8] sm:$0xf0] }
 0x17f   :  { %v361_v21 = vpop.permute.xlu2 %360 }
 0x180   :  { %2476 = vmatpush.xpose.msk.msra.mxu1 %vm93_vm2, %v361_v21 }
 0x1fe   :  { %v115_v22 = vpop.f32.mrf.mxu2 }
 0x1ff   :  { %v118_v23 = vmul.f32 0.35355338, %v115_v22 }
 0x201   :  { %v119_v24 = vsel %vm93_vm2, %v118_v23, -inf }
 0x202   :  { %120 = vmax.xlane.f32.xlu0 %v119_v24 }
 0x275   :  { %v121_v25 = vpop.xlane.xlu0 %120 }
 0x276   :  { %v122_v26 = vsub.f32 %v118_v23, %v121_v25 }
 0x278   :  { %v123_v27 = vmul.f32 1.442695, %v122_v26 }
 0x27a   :  { %3324 = vpow2.f32 %v123_v27  ;;  %v3391_v27 = vmov 32.0  }
 0x280   :  { %v3325_v28 = vpop.eup %3324 }
 0x281   :  { %v125_v29 = vsel %vm93_vm2, %v3325_v28, 0.0 }
 0x282   :  { %126 = vadd.xlane.f32.xlu1 %v125_v29 }
 0x29b   :  { %130 = vrot.lane.b32.xlu1 %v3451_v14, %s3386_s14 }
 0x2a3   :  { %358 = vrot.lane.b32.xlu1 %v3451_v14, %s3387_s15  ;;  %s3393_s15 = smov [#allocation2]  }
 0x2f5   :  { %v127_v30 = vpop.xlane.xlu1 %126 }
 0x2f6   :  { %3326 = vrcp.f32 %v127_v30 }
 0x2fc   :  { %v3327_v31 = vpop.eup %3326 }
 0x2fd   :  { %v129_v33 = vmul.f32 %v3327_v31, %v3325_v28 }
 0x30d   :  { %v131_v32 = vpop.permute.xlu1 %130 }
 0x30e   :  { %151 = vmatpush.msra.mxu3 %v131_v32 }
 0x30f   :  { %2466 = vmatmul.msk.f32.vlgmr.msra.gmra.mxu3 %vm93_vm2, %v129_v33 }
 0x310   :  { %2467 = vmatpush.xpose.msk.msrb.mxu3 %vm93_vm2, %v159_v16 }
 0x314   :  { %2472 = vmatpush.xpose.msk.msra.mxu3 %vm93_vm2, %v271_v18  ;;  %v2463_v18 = vld [vmem:[%s4242_s1 + $0x142] ss:$8 sm:$0x3] }
 0x315   :  { %v359_v35 = vpop.permute.xlu1 %358  ;;  %v449_v21 = vperm.slane %v2463_v18, 0  ;;  %v2502_v18 = vld [vmem:[%s4243_s2 + $0x50] sm:$0xf0] }
 0x317   :  { %2468 = vmatmul.msk.f32.vlgmr.msrb.gmra.mxu3 %vm93_vm2, %v157_v17 }
 0x31f   :  { %2473 = vmatmul.msk.f32.vlgmr.msra.gmra.mxu3 %vm93_vm2, %v269_v19 }
 0x392   :  { %v153_v34 = vpop.f32.mrf.mxu3 }
 0x393   :  { %2471 = vmatmul.msk.f32.vlgmr.msrb.gmra.mxu1 %vm93_vm2, %v153_v34 }
 0x39a   :  { %v181_v36 = vpop.f32.mrf.mxu3 }
 0x39b   :  { %v184_v37 = vmul.f32 0.35355338, %v181_v36  ;;  %2477 = vmatmul.msk.f32.vlgmr.msra.gmra.mxu1 %vm93_vm2, %v359_v35 }
 0x39d   :  { %v185_v38 = vsel %vm93_vm2, %v184_v37, -inf }
 0x39e   :  { %186 = vmax.xlane.f32.xlu2 %v185_v38  ;;  %v2548_v38 = vld [vmem:[%s4243_s2 + $0x80] sm:$0xf] }
 0x3a2   :  { %v293_v39 = vpop.f32.mrf.mxu3 }
 0x3a3   :  { %v296_v40 = vmul.f32 0.35355338, %v293_v39  ;;  %v3174_v39 = vld [vmem:[%s4243_s2 + $0xbc] sm:$0xf0] }
 0x3a5   :  { %v297_v41 = vsel %vm93_vm2, %v296_v40, -inf }
 0x3a6   :  { %298 = vmax.xlane.f32.xlu1 %v297_v41  ;;  %v2549_v41 = vor.u32 %v3174_v39, %v2548_v38 }
 0x3bf   :  { %308 = vrot.lane.b32.xlu1 %v3451_v14, %s3388_s16  ;;  %s2448_s16 = sshll.u32 %s3393_s15, 4  ;;  %s2449_s16 = int_to_ptr.vmem [resolvable:$true] %s2448_s16 }
 0x410   :  { %v3482_v42 = vpop.f32.mrf.mxu1 }
 0x411   :  { %v187_v43 = vpop.xlane.xlu2 %186 }
 0x412   :  { %v188_v44 = vsub.f32 %v184_v37, %v187_v43  ;;  %v2556_v43 = vld [vmem:[%s4243_s2 + $0x88] sm:$0xf] }
 0x414   :  { %v189_v45 = vmul.f32 1.442695, %v188_v44  ;;  %v3175_v44 = vld [vmem:[%s4243_s2 + $0xc4] sm:$0xf0] }
 0x416   :  { %3328 = vpow2.f32 %v189_v45 }
 0x418   :  { %v383_v46 = vpop.f32.mrf.mxu1 }
 0x419   :  { %v386_v47 = vmul.f32 0.35355338, %v383_v46  ;;  %v299_v48 = vpop.xlane.xlu1 %298  ;;  %v2557_v46 = vor.u32 %v3175_v44, %v2556_v43  ;;  %v2582_v43 = vld [vmem:[%s4243_s2 + $0xe0] sm:$0xf0] }
 0x41a   :  { %v300_v49 = vsub.f32 %v296_v40, %v299_v48  ;;  %v3166_v40 = vld [vmem:[%s4243_s2 + $0x84] sm:$0xf]  ;;  %v2558_v48 = vld [vmem:[%s4243_s2 + $0xc8] sm:$0xf0] }
 0x41b   :  { %v387_v50 = vsel %vm93_vm2, %v386_v47, -inf }
 0x41c   :  { %388 = vmax.xlane.f32.xlu0 %v387_v50  ;;  %v301_v51 = vmul.f32 1.442695, %v300_v49  ;;  %v3329_v52 = vpop.eup %3328  ;;  %v2484_v50 = vld [vmem:[%s4243_s2] sm:$0xf] }
 0x41d   :  { %v191_v53 = vsel %vm93_vm2, %v3329_v52, 0.0 }
 0x41e   :  { %3330 = vpow2.f32 %v301_v51  ;;  %v3158_v51 = vld [vmem:[%s4243_s2 + $0x3c] sm:$0xf0] }
 0x424   :  { %192 = vadd.xlane.f32.xlu0 %v191_v53  ;;  %v3331_v54 = vpop.eup %3330  ;;  %v2485_v53 = vor.u32 %v3158_v51, %v2484_v50  ;;  %v2516_v51 = vld [vmem:[%s4243_s2 + $0x20] sm:$0xf] }
 0x425   :  { %v303_v55 = vsel %vm93_vm2, %v3331_v54, 0.0 }
 0x42c   :  { %304 = vadd.xlane.f32.xlu0 %v303_v55  ;;  %v2492_v55 = vld [vmem:[%s4243_s2 + $0x8] sm:$0xf] }
 0x431   :  { %v309_v2 = vpop.permute.xlu1 %308 }
 0x440   :  { %196 = vrot.lane.b32.xlu0 %v3451_v14, %s3389_s17 }
 0x48f   :  { %v389_v56 = vpop.xlane.xlu0 %388 }
 0x490   :  { %v390_v57 = vsub.f32 %v386_v47, %v389_v56  ;;  %v3167_v47 = vld [vmem:[%s4243_s2 + $0x8c] sm:$0xf]  ;;  %v3159_v56 = vld [vmem:[%s4243_s2 + $0x44] sm:$0xf0] }
 0x491   :  { %v2561_v49 = vor.u32 %v3167_v47, %v2558_v48  ;;  %v2590_v47 = vld [vmem:[%s4243_s2 + $0xe8] sm:$0xf0] }
 0x492   :  { %v391_v58 = vmul.f32 1.442695, %v390_v57 }
 0x494   :  { %3332 = vpow2.f32 %v391_v58  ;;  %v2493_v58 = vor.u32 %v3159_v56, %v2492_v55  ;;  %v3154_v55 = vld [vmem:[%s4243_s2 + $0x24] sm:$0xf] }
 0x495   :  { %v2518_v56 = vld [vmem:[%s4243_s2 + $0x60] sm:$0xf0] }
 0x497   :  { %v193_v61 = vpop.xlane.xlu0 %192 }
 0x498   :  { %3334 = vrcp.f32 %v193_v61 }
 0x49a   :  { %v3333_v59 = vpop.eup %3332 }
 0x49b   :  { %v393_v60 = vsel %vm93_vm2, %v3333_v59, 0.0 }
 0x49c   :  { %394 = vadd.xlane.f32.xlu2 %v393_v60  ;;  %v2494_v60 = vld [vmem:[%s4243_s2 + $0x48] sm:$0xf0] }
 0x49e   :  { %v3335_v63 = vpop.eup %3334 }
 0x49f   :  { %v305_v62 = vpop.xlane.xlu0 %304  ;;  %v195_v1 = vmul.f32 %v3335_v63, %v3329_v52  ;;  %v3150_v52 = vld [vmem:[%s4243_s2 + $0x4] sm:$0xf]  ;;  %v2564_v63 = vld [vmem:[%s4243_s2 + $0x90] sm:$0xf] }
 0x4a0   :  { %3336 = vrcp.f32 %v305_v62 }
 0x4a6   :  { %v3337_v3 = vpop.eup %3336 }
 0x4a7   :  { %v307_v4 = vmul.f32 %v3337_v3, %v3331_v54  ;;  %v2486_v54 = vld [vmem:[%s4243_s2 + $0x40] sm:$0xf0] }
 0x4a8   :  { %v2489_v57 = vor.u32 %v3150_v52, %v2486_v54  ;;  %v3162_v52 = vld [vmem:[%s4243_s2 + $0x5c] sm:$0xf0] }
 0x4b2   :  { %v197_v0 = vpop.permute.xlu0 %196 }
 0x4b3   :  { %217 = vmatpush.msrb.mxu0 %v197_v0  ;;  %v3176_v0 = vld [vmem:[%s4243_s2 + $0xcc] sm:$0xf0] }
 0x4b4   :  { %398 = vrot.lane.b32.xlu2 %v3451_v14, %s3390_s18  ;;  %2469 = vmatmul.msk.f32.vlgmr.msrb.gmra.mxu0 %vm93_vm2, %v195_v1  ;;  %v87_v14 = vld [vmem:[%s4242_s1 + $0x90] sm:$0xff]  ;;  %v2565_v3 = vor.u32 %v3176_v0, %v2564_v63 }
 0x4b5   :  { %329 = vmatpush.msra.mxu0 %v309_v2  ;;  %v3168_v1 = vld [vmem:[%s4243_s2 + $0x94] sm:$0xf] }
 0x4b7   :  { %442 = vmatpush.msrb.mxu0 %v87_v14 }
 0x4bc   :  { %2474 = vmatmul.msk.f32.vlgmr.msra.gmra.mxu0 %vm93_vm2, %v307_v4  ;;  %v2566_v4 = vld [vmem:[%s4243_s2 + $0xd0] sm:$0xf0] }
 0x4bd   :  { %775 = vmatpush.bf16.msra.mxu0 %v2561_v49 }
 0x50f   :  { %v395_v5 = vpop.xlane.xlu2 %394 }
 0x510   :  { %3338 = vrcp.f32 %v395_v5  ;;  %v2572_v5 = vld [vmem:[%s4243_s2 + $0x98] sm:$0xf] }
 0x511   :  { %3340 = vrcp.f32 %v3391_v27 }
 0x516   :  { %v3339_v7 = vpop.eup %3338 }
 0x517   :  { %v397_v8 = vmul.f32 %v3339_v7, %v3333_v59  ;;  %v399_v9 = vpop.permute.xlu2 %398  ;;  %v3341_v28 = vpop.eup %3340  ;;  %v3151_v59 = vld [vmem:[%s4243_s2 + $0xc] sm:$0xf]  ;;  %v2569_v7 = vor.u32 %v3168_v1, %v2566_v4  ;;  %v2596_v1 = vld [vmem:[%s4243_s2 + $0xb0] sm:$0xf]  ;;  %v2598_v4 = vld [vmem:[%s4243_s2 + $0xf0] sm:$0xf0] }
 0x518   :  { %419 = vmatpush.msrb.mxu3 %v399_v9  ;;  %v461_v29 = vmul.f32 32.0, %v3341_v28  ;;  %vm465_vm3 = vweird.f32 %v3341_v28  ;;  %v2497_v61 = vor.u32 %v3151_v59, %v2494_v60  ;;  %v3169_v9 = vld [vmem:[%s4243_s2 + $0x9c] sm:$0xf]  ;;  %v3155_v59 = vld [vmem:[%s4243_s2 + $0x2c] sm:$0xf] }
 0x519   :  { %2478 = vmatmul.msk.f32.vlgmr.msrb.gmra.mxu3 %vm93_vm2, %v397_v8  ;;  %v2573_v8 = vor.u32 %v3177_v6, %v2572_v5  ;;  %v2577_v14 = vor.u32 %v3169_v9, %v2574_v11  ;;  %v2526_v60 = vld [vmem:[%s4243_s2 + $0x68] sm:$0xf0]  ;;  %v2604_v5 = vld [vmem:[%s4243_s2 + $0xb8] sm:$0xf] }
 0x51a   :  { %v462_v30 = vsub.f32 1.0, %v461_v29  ;;  %762 = vmatpush.bf16.msra.mxu3 %v2557_v46  ;;  %776 = vmatpush.bf16.msra.mxu0 %v2497_v61  ;;  %v3171_v46 = vld [vmem:[%s4243_s2 + $0xac] sm:$0xf]  ;;  %v2517_v61 = vor.u32 %v3162_v52, %v2516_v51  ;;  %v2529_v0 = vor.u32 %v3155_v59, %v2526_v60  ;;  %v3181_v6 = vld [vmem:[%s4243_s2 + $0xf4] sm:$0xf0]  ;;  %v3182_v59 = vld [vmem:[%s4244_s3] sm:$0xff] }
 0x51b   :  { %v2593_v54 = vor.u32 %v3171_v46, %v2590_v47  ;;  %v3201_v46 = vld [vmem:[%s4244_s3 + $0x98] sm:$0xff]  ;;  %v3192_v47 = vld [vmem:[%s4244_s3 + $0x50] sm:$0xff]  ;;  %v3191_v51 = vld [vmem:[%s4244_s3 + $0x48] sm:$0xff] }
 0x51c   :  { %v463_v31 = vmul.f32 %v3341_v28, %v462_v30  ;;  %v2480_v30 = vld [vmem:[%s4242_s1 + $0x143] ss:$8 sm:$0x3] }
 0x51d   :  { %v3207_v52 = vld [vmem:[%s4244_s3 + $0xc8] sm:$0xff]  ;;  %v3198_v60 = vld [vmem:[%s4244_s3 + $0x80] sm:$0xff] }
 0x51e   :  { %v464_v32 = vadd.f32 %v3341_v28, %v463_v31  ;;  %763 = vmatpush.bf16.msra.mxu3 %v2493_v58  ;;  %v3163_v58 = vld [vmem:[%s4243_s2 + $0x64] sm:$0xf0] }
 0x520   :  { %v3511_v33 = vsel %vm465_vm3, %v3341_v28, %v464_v32  ;;  %v2481_v32 = vld [vmem:[%s4242_s1 + $0x144] ss:$8 sm:$0x3]  ;;  %vm2441_vm3 = vcmask 122880  }
 0x522   :  { %814 = vmatpush.bf16.msrb.mxu3 %v2573_v8  ;;  %v2606_v8 = vld [vmem:[%s4243_s2 + $0xf8] sm:$0xf0] }
 0x531   :  { %v219_v12 = vpop.f32.mrf.mxu0 }
 0x532   :  { %2470 = vmatmul.msk.f32.vlgmr.msrb.gmra.mxu2 %vm93_vm2, %v219_v12  ;;  %v2500_v12 = vld [vmem:[%s4243_s2 + $0x10] sm:$0xf] }
 0x533   :  { %736 = vmatpush.bf16.msrb.mxu2 %v2549_v41  ;;  %v3178_v41 = vld [vmem:[%s4243_s2 + $0xdc] sm:$0xf0] }
 0x537   :  { %737 = vmatpush.bf16.msrb.mxu2 %v2485_v53 }
 0x539   :  { %v331_v13 = vpop.f32.mrf.mxu0 }
 0x53a   :  { %2475 = vmatmul.msk.f32.vlgmr.msra.gmra.mxu2 %vm93_vm2, %v331_v13 }
 0x53b   :  { %788 = vmatpush.bf16.msra.mxu2 %v2565_v3  ;;  %v3172_v3 = vld [vmem:[%s4243_s2 + $0xb4] sm:$0xf] }
 0x53c   :  { %v2601_v11 = vor.u32 %v3172_v3, %v2598_v4  ;;  %v3227_v3 = vld [vmem:[%s4244_s3 + $0x168] sm:$0xff] }
 0x53d   :  { %v3243_v4 = vld [vmem:[%s4244_s3 + $0x1e8] sm:$0xff] }
 0x59c   :  { %v421_v15 = vpop.f32.mrf.mxu3 }
 0x59d   :  { %2479 = vmatmul.msk.f32.vlgmr.msrb.gmra.mxu0 %vm93_vm2, %v421_v15  ;;  %v3160_v15 = vld [vmem:[%s4243_s2 + $0x4c] sm:$0xf0] }
 0x59e   :  { %827 = vmatpush.bf16.msrb.mxu0 %v2577_v14  ;;  %v2605_v14 = vor.u32 %v3181_v6, %v2604_v5  ;;  %v3219_v5 = vld [vmem:[%s4244_s3 + $0x128] sm:$0xff] }
 0x59f   :  { %v3235_v6 = vld [vmem:[%s4244_s3 + $0x1a8] sm:$0xff] }
 0x5b5   :  { %v242_v16 = vpop.f32.mrf.mxu2 }
 0x5b6   :  { %v266_v19 = vadd.f32 %v3482_v42, %v242_v16  ;;  %v2550_v42 = vld [vmem:[%s4243_s2 + $0xc0] sm:$0xf0]  ;;  %v3152_v16 = vld [vmem:[%s4243_s2 + $0x14] sm:$0xf] }
 0x5b7   :  { %v2553_v45 = vor.u32 %v3166_v40, %v2550_v42  ;;  %v2580_v40 = vld [vmem:[%s4243_s2 + $0xa0] sm:$0xf]  ;;  %v3170_v42 = vld [vmem:[%s4243_s2 + $0xa4] sm:$0xf] }
 0x5b8   :  { %v2581_v49 = vor.u32 %v3178_v41, %v2580_v40  ;;  %v2585_v50 = vor.u32 %v3170_v42, %v2582_v43  ;;  %v3210_v40 = vld [vmem:[%s4244_s3 + $0xe0] sm:$0xff]  ;;  %v3193_v43 = vld [vmem:[%s4244_s3 + $0x58] sm:$0xff] }
 0x5b9   :  { %749 = vmatpush.bf16.msrb.mxu1 %v2553_v45  ;;  %v3179_v45 = vld [vmem:[%s4243_s2 + $0xe4] sm:$0xf0]  ;;  %v3186_v41 = vld [vmem:[%s4244_s3 + $0x20] sm:$0xff] }
 0x5ba   :  { %v3202_v42 = vld [vmem:[%s4244_s3 + $0xa0] sm:$0xff] }
 0x5bd   :  { %v354_v17 = vpop.f32.mrf.mxu2  ;;  %750 = vmatpush.bf16.msrb.mxu1 %v2489_v57  ;;  %v2524_v57 = vld [vmem:[%s4243_s2 + $0x28] sm:$0xf] }
 0x5be   :  { %v357_v20 = vadd.f32 %v354_v17, %v266_v19  ;;  %v2501_v17 = vor.u32 %v3160_v15, %v2500_v12  ;;  %v2508_v19 = vld [vmem:[%s4243_s2 + $0x18] sm:$0xf]  ;;  %v2525_v63 = vor.u32 %v3163_v58, %v2524_v57  ;;  %v2532_v12 = vld [vmem:[%s4243_s2 + $0x30] sm:$0xf] }
 0x5bf   :  { %v3229_v57 = vld [vmem:[%s4244_s3 + $0x178] sm:$0xff] }
 0x5c0   :  { %789 = vmatpush.bf16.msra.mxu2 %v2501_v17  ;;  %v2534_v17 = vld [vmem:[%s4243_s2 + $0x70] sm:$0xf0]  ;;  %v3245_v58 = vld [vmem:[%s4244_s3 + $0x1f8] sm:$0xff] }
 0x5c1   :  { %801 = vmatpush.bf16.msra.mxu1 %v2569_v7  ;;  %v3173_v7 = vld [vmem:[%s4243_s2 + $0xbc] sm:$0xf] }
 0x5c2   :  { %v2609_v15 = vor.u32 %v3173_v7, %v2606_v8  ;;  %v3226_v7 = vld [vmem:[%s4244_s3 + $0x160] sm:$0xff] }
 0x5c3   :  { %v3242_v8 = vld [vmem:[%s4244_s3 + $0x1e0] sm:$0xff] }
 0x61a   :  { %v444_v22 = vpop.f32.mrf.mxu0 }
 0x61b   :  { %v447_v23 = vadd.f32 %v444_v22, %v357_v20  ;;  %v3161_v20 = vld [vmem:[%s4243_s2 + $0x54] sm:$0xf0] }
 0x61c   :  { %v2509_v22 = vor.u32 %v3161_v20, %v2508_v19  ;;  %v3165_v19 = vld [vmem:[%s4243_s2 + $0x74] sm:$0xf0]  ;;  %v3157_v20 = vld [vmem:[%s4243_s2 + $0x3c] sm:$0xf] }
 0x61d   :  { %v451_v24 = vadd.f32 %v449_v21, %v447_v23  ;;  %v2505_v21 = vor.u32 %v3152_v16, %v2502_v18  ;;  %v3153_v23 = vld [vmem:[%s4243_s2 + $0x1c] sm:$0xf]  ;;  %v3156_v16 = vld [vmem:[%s4243_s2 + $0x34] sm:$0xf]  ;;  %v2540_v18 = vld [vmem:[%s4243_s2 + $0x38] sm:$0xf] }
 0x61e   :  { %815 = vmatpush.bf16.msrb.mxu3 %v2509_v22 }
 0x61f   :  { %v456_v25 = vadd.f32 %v451_v24, %v3444_v10  ;;  %v2510_v24 = vld [vmem:[%s4243_s2 + $0x58] sm:$0xf0]  ;;  %802 = vmatpush.bf16.msra.mxu1 %v2505_v21 }
 0x620   :  { %v2542_v21 = vld [vmem:[%s4243_s2 + $0x78] sm:$0xf0] }
 0x621   :  { %v457_v26 = vsel %vm60_vm1, %v456_v25, 0.0 }
 0x622   :  { %458 = vadd.xlane.f32.xlu0 %v457_v26 }
 0x695   :  { %v459_v34 = vpop.xlane.xlu0 %458 }
 0x696   :  { %v467_v35 = vmul.f32 %v3511_v33, %v459_v34 }
 0x698   :  { %v3514_v36 = vsub.f32 %v456_v25, %v467_v35  ;;  %v2513_v25 = vor.u32 %v3153_v23, %v2510_v24  ;;  %v487_v35 = vperm.slane %v2480_v30, 0  ;;  %v2537_v23 = vor.u32 %v3156_v16, %v2534_v17  ;;  %v3196_v30 = vld [vmem:[%s4244_s3 + $0x70] sm:$0xff]  ;;  %v3217_v16 = vld [vmem:[%s4244_s3 + $0x118] sm:$0xff] }
 0x699   :  { %v2541_v24 = vor.u32 %v3165_v19, %v2540_v18  ;;  %v3233_v17 = vld [vmem:[%s4244_s3 + $0x198] sm:$0xff]  ;;  %v3223_v18 = vld [vmem:[%s4244_s3 + $0x148] sm:$0xff] }
 0x69a   :  { %v469_v10 = vmul.f32 %v3514_v36, %v3514_v36  ;;  %828 = vmatpush.bf16.msrb.mxu0 %v2513_v25  ;;  %v2545_v25 = vor.u32 %v3157_v20, %v2542_v21  ;;  %v3239_v19 = vld [vmem:[%s4244_s3 + $0x1c8] sm:$0xff]  ;;  %v3216_v20 = vld [vmem:[%s4244_s3 + $0x110] sm:$0xff] }
 0x69b   :  { %v3232_v21 = vld [vmem:[%s4244_s3 + $0x190] sm:$0xff] }
 0x69c   :  { %v470_v37 = vsel %vm60_vm1, %v469_v10, 0.0 }
 0x69d   :  { %471 = vadd.xlane.f32.xlu1 %v470_v37  ;;  %v491_v37 = vperm.slane %v2481_v32, 0  ;;  %v3188_v32 = vld [vmem:[%s4244_s3 + $0x30] sm:$0xff] }
 0x710   :  { %v472_v62 = vpop.xlane.xlu1 %471 }
 0x711   :  { %v473_v2 = vmul.f32 %v472_v62, %v3511_v33  ;;  %v2521_v62 = vor.u32 %v3154_v55, %v2518_v56  ;;  %v3190_v55 = vld [vmem:[%s4244_s3 + $0x40] sm:$0xff] }
 0x712   :  { %v3206_v56 = vld [vmem:[%s4244_s3 + $0xc0] sm:$0xff] }
 0x713   :  { %v474_v13 = vadd.f32 1e-05, %v473_v2  ;;  %v3180_v2 = vld [vmem:[%s4243_s2 + $0xec] sm:$0xf0] }
 0x714   :  { %v2597_v9 = vor.u32 %v3180_v2, %v2596_v1  ;;  %v3220_v1 = vld [vmem:[%s4244_s3 + $0x130] sm:$0xff] }
 0x715   :  { %3342 = vrsqrt.f32 %v474_v13  ;;  %vm481_vm5 = vweird.f32 %v474_v13  ;;  %v3236_v2 = vld [vmem:[%s4244_s3 + $0x1b0] sm:$0xff] }
 0x71b   :  { %v3343_v26 = vpop.eup %3342 }
 0x71c   :  { %v476_v27 = vmul.f32 %v3343_v26, %v474_v13  ;;  %vm482_vm4 = vweird.f32 %v3343_v26  ;;  %v3164_v13 = vld [vmem:[%s4243_s2 + $0x6c] sm:$0xf0] }
 0x71d   :  { %vm483_vm6 = vmor %vm481_vm5, %vm482_vm4  ;;  %v2533_v22 = vor.u32 %v3164_v13, %v2532_v12  ;;  %v3225_v12 = vld [vmem:[%s4244_s3 + $0x158] sm:$0xff] }
 0x71e   :  { %v477_v28 = vmul.f32 %v3343_v26, %v476_v27  ;;  %v3213_v27 = vld [vmem:[%s4244_s3 + $0xf8] sm:$0xff] }
 0x71f   :  { %v3241_v13 = vld [vmem:[%s4244_s3 + $0x1d8] sm:$0xff] }
 0x720   :  { %v478_v29 = vmul.f32 0.5, %v477_v28  ;;  %v3189_v28 = vld [vmem:[%s4244_s3 + $0x38] sm:$0xff] }
 0x722   :  { %v479_v31 = vsub.f32 1.5, %v478_v29  ;;  %v3205_v29 = vld [vmem:[%s4244_s3 + $0xb8] sm:$0xff] }
 0x724   :  { %v480_v34 = vmul.f32 %v3343_v26, %v479_v31  ;;  %v3212_v31 = vld [vmem:[%s4244_s3 + $0xf0] sm:$0xff] }
 0x726   :  { %v484_v10 = vsel %vm483_vm6, %v3343_v26, %v480_v34  ;;  %v3197_v26 = vld [vmem:[%s4244_s3 + $0x78] sm:$0xff]  ;;  %v3204_v34 = vld [vmem:[%s4244_s3 + $0xb0] sm:$0xff] }
 0x727   :  { %v485_v38 = vmul.f32 %v484_v10, %v3514_v36  ;;  %v2588_v36 = vld [vmem:[%s4243_s2 + $0xa8] sm:$0xf] }
 0x728   :  { %v2589_v53 = vor.u32 %v3179_v45, %v2588_v36  ;;  %v3211_v10 = vld [vmem:[%s4244_s3 + $0xe8] sm:$0xff]  ;;  %v3209_v36 = vld [vmem:[%s4244_s3 + $0xd8] sm:$0xff] }
 0x729   :  { %v489_v39 = vmul.f32 %v487_v35, %v485_v38  ;;  %v3195_v35 = vld [vmem:[%s4244_s3 + $0x68] sm:$0xff]  ;;  %v3185_v45 = vld [vmem:[%s4244_s3 + $0x18] sm:$0xff] }
 0x72a   :  { %v3203_v38 = vld [vmem:[%s4244_s3 + $0xa8] sm:$0xff] }
 0x72b   :  { %v3638_v44 = vadd.f32 %v491_v37, %v489_v39  ;;  %v3187_v37 = vld [vmem:[%s4244_s3 + $0x28] sm:$0xff]  ;;  %v3194_v39 = vld [vmem:[%s4244_s3 + $0x60] sm:$0xff] }
 0x72d   :  { %v3651_v48 = vpack.c.bf16 %v3638_v44, %v3638_v44 }
 0x72f   :  { %2610 = vmatmul.msk.bf16.vlgmr.msrb.gmra.mxu2 %vm60_vm1, %v3651_v48  ;;  %2611 = vmatmul.msk.bf16.vlgmr.msrb.gmra.mxu1 %vm60_vm1, %v3651_v48 }
 0x730   :  { %2612 = vmatmul.msk.bf16.vlgmr.msra.gmra.mxu3 %vm60_vm1, %v3651_v48  ;;  %2613 = vmatmul.msk.bf16.vlgmr.msra.gmra.mxu0 %vm60_vm1, %v3651_v48 }
 0x731   :  { %840 = vmatpush.bf16.msrb.mxu2 %v2581_v49  ;;  %853 = vmatpush.bf16.msrb.mxu1 %v2585_v50  ;;  %v3208_v49 = vld [vmem:[%s4244_s3 + $0xd0] sm:$0xff] }
 0x732   :  { %866 = vmatpush.bf16.msra.mxu3 %v2589_v53  ;;  %879 = vmatpush.bf16.msra.mxu0 %v2593_v54  ;;  %v3184_v50 = vld [vmem:[%s4244_s3 + $0x10] sm:$0xff]  ;;  %v3183_v53 = vld [vmem:[%s4244_s3 + $0x8] sm:$0xff] }
 0x733   :  { %v3199_v54 = vld [vmem:[%s4244_s3 + $0x88] sm:$0xff] }
 0x735   :  { %841 = vmatpush.bf16.msrb.mxu2 %v2517_v61  ;;  %854 = vmatpush.bf16.msrb.mxu1 %v2521_v62  ;;  %v3221_v61 = vld [vmem:[%s4244_s3 + $0x138] sm:$0xff] }
 0x736   :  { %867 = vmatpush.bf16.msra.mxu3 %v2525_v63  ;;  %880 = vmatpush.bf16.msra.mxu0 %v2529_v0  ;;  %v3237_v62 = vld [vmem:[%s4244_s3 + $0x1b8] sm:$0xff]  ;;  %v3228_v63 = vld [vmem:[%s4244_s3 + $0x170] sm:$0xff] }
 0x737   :  { %v3244_v0 = vld [vmem:[%s4244_s3 + $0x1f0] sm:$0xff] }
 0x73f   :  { %2614 = vmatmul.msk.bf16.vlgmr.msra.gmra.mxu2 %vm60_vm1, %v3651_v48  ;;  %2615 = vmatmul.msk.bf16.vlgmr.msra.gmra.mxu1 %vm60_vm1, %v3651_v48 }
 0x740   :  { %2616 = vmatmul.msk.bf16.vlgmr.msrb.gmra.mxu3 %vm60_vm1, %v3651_v48  ;;  %2617 = vmatmul.msk.bf16.vlgmr.msrb.gmra.mxu0 %vm60_vm1, %v3651_v48 }
 0x741   :  { %892 = vmatpush.bf16.msra.mxu2 %v2597_v9  ;;  %905 = vmatpush.bf16.msra.mxu1 %v2601_v11  ;;  %v3218_v9 = vld [vmem:[%s4244_s3 + $0x120] sm:$0xff] }
 0x742   :  { %918 = vmatpush.bf16.msrb.mxu3 %v2605_v14  ;;  %931 = vmatpush.bf16.msrb.mxu0 %v2609_v15  ;;  %v3234_v11 = vld [vmem:[%s4244_s3 + $0x1a0] sm:$0xff]  ;;  %v3224_v14 = vld [vmem:[%s4244_s3 + $0x150] sm:$0xff] }
 0x743   :  { %v3240_v15 = vld [vmem:[%s4244_s3 + $0x1d0] sm:$0xff] }
 0x745   :  { %893 = vmatpush.bf16.msra.mxu2 %v2533_v22  ;;  %906 = vmatpush.bf16.msra.mxu1 %v2537_v23  ;;  %v3222_v22 = vld [vmem:[%s4244_s3 + $0x140] sm:$0xff] }
 0x746   :  { %919 = vmatpush.bf16.msrb.mxu3 %v2541_v24  ;;  %932 = vmatpush.bf16.msrb.mxu0 %v2545_v25  ;;  %v3238_v23 = vld [vmem:[%s4244_s3 + $0x1c0] sm:$0xff]  ;;  %v3215_v24 = vld [vmem:[%s4244_s3 + $0x108] sm:$0xff] }
 0x747   :  { %v3231_v25 = vld [vmem:[%s4244_s3 + $0x188] sm:$0xff] }
 0x74f   :  { %2618 = vmatmul.msk.bf16.vlgmr.msrb.gmra.mxu2 %vm60_vm1, %v3651_v48  ;;  %2619 = vmatmul.msk.bf16.vlgmr.msrb.gmra.mxu1 %vm60_vm1, %v3651_v48 }
 0x750   :  { %2620 = vmatmul.msk.bf16.vlgmr.msra.gmra.mxu3 %vm60_vm1, %v3651_v48  ;;  %2621 = vmatmul.msk.bf16.vlgmr.msra.gmra.mxu0 %vm60_vm1, %v3651_v48 }
 0x751   :  { %2012 = vmatpush.bf16.msrb.mxu1 %v3197_v26  ;;  %2038 = vmatpush.bf16.msra.mxu0 %v3213_v27  ;;  %v3214_v26 = vld [vmem:[%s4244_s3 + $0x100] sm:$0xff] }
 0x752   :  { %1999 = vmatpush.bf16.msrb.mxu2 %v3189_v28  ;;  %2025 = vmatpush.bf16.msra.mxu3 %v3205_v29  ;;  %v3230_v27 = vld [vmem:[%s4244_s3 + $0x180] sm:$0xff]  ;;  %v527_v29 = vld [vmem:[%s4243_s2 + $0x108] sm:$0x11] }
 0x753   :  { %v526_v28 = vld [vmem:[%s4243_s2 + $0x100] sm:$0x11] }
 0x755   :  { %2013 = vmatpush.bf16.msrb.mxu1 %v3196_v30  ;;  %2039 = vmatpush.bf16.msra.mxu0 %v3212_v31  ;;  %v535_v30 = vunpack.c.h.bf16 %v526_v28  ;;  %v537_v31 = vunpack.c.h.bf16 %v527_v29 }
 0x756   :  { %2000 = vmatpush.bf16.msrb.mxu2 %v3188_v32  ;;  %2026 = vmatpush.bf16.msra.mxu3 %v3204_v34 }
 0x757   :  { %v552_v32 = vperm.slane %v535_v30, 0  ;;  %v554_v34 = vperm.slane %v537_v31, 0  ;;  %v3250_v31 = vld [vmem:[%s4244_s3 + $0x220] sm:$0xff] }
 0x759   :  { %2014 = vmatpush.bf16.msrb.mxu1 %v3195_v35  ;;  %2040 = vmatpush.bf16.msra.mxu0 %v3211_v10  ;;  %v534_v35 = vunpack.c.l.bf16 %v526_v28  ;;  %v3273_v28 = vld [vmem:[%s4244_s3 + $0x2d8] sm:$0xff] }
 0x75a   :  { %2001 = vmatpush.bf16.msrb.mxu2 %v3187_v37  ;;  %2027 = vmatpush.bf16.msra.mxu3 %v3203_v38  ;;  %v536_v37 = vunpack.c.l.bf16 %v527_v29 }
 0x75d   :  { %2015 = vmatpush.bf16.msrb.mxu1 %v3194_v39  ;;  %2041 = vmatpush.bf16.msra.mxu0 %v3210_v40 }
 0x75e   :  { %2002 = vmatpush.bf16.msrb.mxu2 %v3186_v41  ;;  %2028 = vmatpush.bf16.msra.mxu3 %v3202_v42  ;;  %v551_v42 = vperm.slane %v534_v35, 0 }
 0x75f   :  { %2622 = vmatmul.msk.bf16.vlgmr.msra.gmra.mxu2 %vm60_vm1, %v3651_v48  ;;  %2623 = vmatmul.msk.bf16.vlgmr.msra.gmra.mxu1 %vm60_vm1, %v3651_v48 }
 0x760   :  { %2624 = vmatmul.msk.bf16.vlgmr.msrb.gmra.mxu3 %vm60_vm1, %v3651_v48  ;;  %2625 = vmatmul.msk.bf16.vlgmr.msrb.gmra.mxu0 %vm60_vm1, %v3651_v48  ;;  %v3200_v48 = vld [vmem:[%s4244_s3 + $0x90] sm:$0xff] }
 0x761   :  { %2016 = vmatpush.bf16.msrb.mxu1 %v3193_v43  ;;  %2042 = vmatpush.bf16.msra.mxu0 %v3209_v36  ;;  %v553_v36 = vperm.slane %v536_v37, 0  ;;  %v531_v37 = vld [vmem:[%s4243_s2 + $0x128] sm:$0x11] }
 0x762   :  { %2003 = vmatpush.bf16.msrb.mxu2 %v3185_v45  ;;  %2029 = vmatpush.bf16.msra.mxu3 %v3201_v46  ;;  %v3261_v45 = vld [vmem:[%s4244_s3 + $0x278] sm:$0xff] }
 0x765   :  { %2017 = vmatpush.bf16.msrb.mxu1 %v3192_v47  ;;  %2043 = vmatpush.bf16.msra.mxu0 %v3208_v49  ;;  %v3277_v47 = vld [vmem:[%s4244_s3 + $0x2f8] sm:$0xff] }
 0x766   :  { %2004 = vmatpush.bf16.msrb.mxu2 %v3184_v50  ;;  %2030 = vmatpush.bf16.msra.mxu3 %v3200_v48  ;;  %v528_v48 = vld [vmem:[%s4243_s2 + $0x110] sm:$0x11] }
 0x769   :  { %2018 = vmatpush.bf16.msrb.mxu1 %v3191_v51  ;;  %2044 = vmatpush.bf16.msra.mxu0 %v3207_v52 }
 0x76a   :  { %2005 = vmatpush.bf16.msrb.mxu2 %v3183_v53  ;;  %2031 = vmatpush.bf16.msra.mxu3 %v3199_v54  ;;  %v529_v53 = vld [vmem:[%s4243_s2 + $0x118] sm:$0x11] }
 0x76d   :  { %2019 = vmatpush.bf16.msrb.mxu1 %v3190_v55  ;;  %2045 = vmatpush.bf16.msra.mxu0 %v3206_v56  ;;  %v3260_v56 = vld [vmem:[%s4244_s3 + $0x270] sm:$0xff] }
 0x76e   :  { %2006 = vmatpush.bf16.msrb.mxu2 %v3182_v59  ;;  %2032 = vmatpush.bf16.msra.mxu3 %v3198_v60  ;;  %v3276_v59 = vld [vmem:[%s4244_s3 + $0x2f0] sm:$0xff]  ;;  %v539_v60 = vunpack.c.h.bf16 %v528_v48 }
 0x771   :  { %2064 = vmatpush.bf16.msra.mxu1 %v3229_v57  ;;  %2090 = vmatpush.bf16.msrb.mxu0 %v3245_v58 }
 0x772   :  { %2051 = vmatpush.bf16.msra.mxu2 %v3221_v61  ;;  %2077 = vmatpush.bf16.msrb.mxu3 %v3237_v62  ;;  %v3253_v62 = vld [vmem:[%s4244_s3 + $0x238] sm:$0xff] }
 0x775   :  { %2065 = vmatpush.bf16.msra.mxu1 %v3228_v63  ;;  %2091 = vmatpush.bf16.msrb.mxu0 %v3244_v0  ;;  %v541_v63 = vunpack.c.h.bf16 %v529_v53 }
 0x776   :  { %2052 = vmatpush.bf16.msra.mxu2 %v3220_v1  ;;  %2078 = vmatpush.bf16.msrb.mxu3 %v3236_v2  ;;  %v3269_v1 = vld [vmem:[%s4244_s3 + $0x2b8] sm:$0xff] }
 0x779   :  { %2066 = vmatpush.bf16.msra.mxu1 %v3227_v3  ;;  %2092 = vmatpush.bf16.msrb.mxu0 %v3243_v4  ;;  %v3259_v3 = vld [vmem:[%s4244_s3 + $0x268] sm:$0xff] }
 0x77a   :  { %2053 = vmatpush.bf16.msra.mxu2 %v3219_v5  ;;  %2079 = vmatpush.bf16.msrb.mxu3 %v3235_v6  ;;  %v3275_v4 = vld [vmem:[%s4244_s3 + $0x2e8] sm:$0xff]  ;;  %v556_v5 = vperm.slane %v539_v60, 0 }
 0x77d   :  { %2067 = vmatpush.bf16.msra.mxu1 %v3226_v7  ;;  %2093 = vmatpush.bf16.msrb.mxu0 %v3242_v8  ;;  %v558_v7 = vperm.slane %v541_v63, 0  ;;  %v3252_v8 = vld [vmem:[%s4244_s3 + $0x230] sm:$0xff] }
 0x77e   :  { %2054 = vmatpush.bf16.msra.mxu2 %v3218_v9  ;;  %2080 = vmatpush.bf16.msrb.mxu3 %v3234_v11  ;;  %v3268_v11 = vld [vmem:[%s4244_s3 + $0x2b0] sm:$0xff] }
 0x781   :  { %2068 = vmatpush.bf16.msra.mxu1 %v3225_v12  ;;  %2094 = vmatpush.bf16.msrb.mxu0 %v3241_v13  ;;  %v538_v12 = vunpack.c.l.bf16 %v528_v48 }
 0x782   :  { %2055 = vmatpush.bf16.msra.mxu2 %v3217_v16  ;;  %2081 = vmatpush.bf16.msrb.mxu3 %v3233_v17 }
 0x785   :  { %2069 = vmatpush.bf16.msra.mxu1 %v3224_v14  ;;  %2095 = vmatpush.bf16.msrb.mxu0 %v3240_v15  ;;  %v3258_v14 = vld [vmem:[%s4244_s3 + $0x260] sm:$0xff]  ;;  %v540_v15 = vunpack.c.l.bf16 %v529_v53 }
 0x786   :  { %2056 = vmatpush.bf16.msra.mxu2 %v3216_v20  ;;  %2082 = vmatpush.bf16.msrb.mxu3 %v3232_v21  ;;  %v3251_v20 = vld [vmem:[%s4244_s3 + $0x228] sm:$0xff] }
 0x789   :  { %2070 = vmatpush.bf16.msra.mxu1 %v3223_v18  ;;  %2096 = vmatpush.bf16.msrb.mxu0 %v3239_v19  ;;  %v3274_v18 = vld [vmem:[%s4244_s3 + $0x2e0] sm:$0xff] }
 0x78a   :  { %2057 = vmatpush.bf16.msra.mxu2 %v3215_v24  ;;  %2083 = vmatpush.bf16.msrb.mxu3 %v3231_v25  ;;  %v557_v25 = vperm.slane %v540_v15, 0 }
 0x78d   :  { %2071 = vmatpush.bf16.msra.mxu1 %v3222_v22  ;;  %2097 = vmatpush.bf16.msrb.mxu0 %v3238_v23  ;;  %v3267_v22 = vld [vmem:[%s4244_s3 + $0x2a8] sm:$0xff]  ;;  %v555_v23 = vperm.slane %v538_v12, 0 }
 0x78e   :  { %2058 = vmatpush.bf16.msra.mxu2 %v3214_v26  ;;  %2084 = vmatpush.bf16.msrb.mxu3 %v3230_v27  ;;  %v3257_v26 = vld [vmem:[%s4244_s3 + $0x258] sm:$0xff] }
 0x7ac   :  { %v752_v10 = vpop.f32.mrf.mxu1 }
 0x7ad   :  { %v753_v38 = vadd.f32 %v752_v10, %v552_v32  ;;  %v778_v39 = vpop.f32.mrf.mxu0  ;;  %v530_v32 = vld [vmem:[%s4243_s2 + $0x120] sm:$0x11] }
 0x7ae   :  { %v779_v40 = vadd.f32 %v778_v39, %v554_v34  ;;  %v3266_v10 = vld [vmem:[%s4244_s3 + $0x2a0] sm:$0xff] }
 0x7af   :  { %v939_v41 = vmax.f32 %v753_v38, 0.0 }
 0x7b0   :  { %v941_v43 = vmax.f32 %v779_v40, 0.0  ;;  %v3256_v40 = vld [vmem:[%s4244_s3 + $0x250] sm:$0xff] }
 0x7b1   :  { %v957_v46 = vpack.c.bf16 %v939_v41, %v939_v41 }
 0x7b2   :  { %v959_v49 = vpack.c.bf16 %v941_v43, %v941_v43  ;;  %v739_v50 = vpop.f32.mrf.mxu2  ;;  %v3272_v43 = vld [vmem:[%s4244_s3 + $0x2d0] sm:$0xff] }
 0x7b3   :  { %v740_v51 = vadd.f32 %v739_v50, %v551_v42  ;;  %v765_v52 = vpop.f32.mrf.mxu3  ;;  %2020 = vmatmul.bf16.vlgmr.msrb.gmra.mxu1 %v957_v46  ;;  %v3249_v46 = vld [vmem:[%s4244_s3 + $0x218] sm:$0xff] }
 0x7b4   :  { %v766_v54 = vadd.f32 %v765_v52, %v553_v36  ;;  %2046 = vmatmul.bf16.vlgmr.msra.gmra.mxu0 %v959_v49  ;;  %2116 = vmatpush.bf16.msrb.mxu1 %v3261_v45  ;;  %v754_v55 = vpop.f32.mrf.mxu1  ;;  %v543_v36 = vunpack.c.h.bf16 %v530_v32  ;;  %v3265_v50 = vld [vmem:[%s4244_s3 + $0x298] sm:$0xff]  ;;  %v3271_v52 = vld [vmem:[%s4244_s3 + $0x2c8] sm:$0xff] }
 0x7b5   :  { %v938_v57 = vmax.f32 %v740_v51, 0.0  ;;  %2142 = vmatpush.bf16.msra.mxu0 %v3277_v47  ;;  %v780_v58 = vpop.f32.mrf.mxu0  ;;  %v545_v47 = vunpack.c.h.bf16 %v531_v37  ;;  %v3255_v51 = vld [vmem:[%s4244_s3 + $0x248] sm:$0xff] }
 0x7b6   :  { %v940_v61 = vmax.f32 %v766_v54, 0.0  ;;  %v560_v53 = vperm.slane %v543_v36, 0  ;;  %v3264_v58 = vld [vmem:[%s4244_s3 + $0x290] sm:$0xff] }
 0x7b7   :  { %v956_v0 = vpack.c.bf16 %v938_v57, %v938_v57  ;;  %v562_v55 = vperm.slane %v545_v47, 0  ;;  %v3305_v47 = vld [vmem:[%s4244_s3 + $0x3d8] sm:$0xff] }
 0x7b8   :  { %v958_v2 = vpack.c.bf16 %v940_v61, %v940_v61  ;;  %2117 = vmatpush.bf16.msrb.mxu1 %v3260_v56  ;;  %v3248_v56 = vld [vmem:[%s4244_s3 + $0x210] sm:$0xff]  ;;  %v3254_v61 = vld [vmem:[%s4244_s3 + $0x240] sm:$0xff] }
 0x7b9   :  { %2143 = vmatpush.bf16.msra.mxu0 %v3276_v59  ;;  %2007 = vmatmul.bf16.vlgmr.msrb.gmra.mxu2 %v956_v0  ;;  %v542_v59 = vunpack.c.l.bf16 %v530_v32 }
 0x7ba   :  { %2033 = vmatmul.bf16.vlgmr.msra.gmra.mxu3 %v958_v2  ;;  %2103 = vmatpush.bf16.msrb.mxu2 %v3253_v62  ;;  %v741_v6 = vpop.f32.mrf.mxu2  ;;  %v544_v62 = vunpack.c.l.bf16 %v531_v37  ;;  %v3293_v2 = vld [vmem:[%s4244_s3 + $0x378] sm:$0xff]  ;;  %v3306_v37 = vld [vmem:[%s4244_s3 + $0x3e0] sm:$0xff] }
 0x7bb   :  { %2129 = vmatpush.bf16.msra.mxu3 %v3269_v1  ;;  %v767_v9 = vpop.f32.mrf.mxu3  ;;  %v3270_v1 = vld [vmem:[%s4244_s3 + $0x2c0] sm:$0xff] }
 0x7bc   :  { %2118 = vmatpush.bf16.msrb.mxu1 %v3259_v3  ;;  %v804_v13 = vpop.f32.mrf.mxu1 }
 0x7bd   :  { %2144 = vmatpush.bf16.msra.mxu0 %v3275_v4  ;;  %v805_v16 = vadd.f32 %v804_v13, %v556_v5  ;;  %v830_v17 = vpop.f32.mrf.mxu0  ;;  %v3309_v4 = vld [vmem:[%s4244_s3 + $0x3f8] sm:$0xff]  ;;  %v3247_v5 = vld [vmem:[%s4244_s3 + $0x208] sm:$0xff]  ;;  %v3292_v13 = vld [vmem:[%s4244_s3 + $0x370] sm:$0xff] }
 0x7be   :  { %v831_v19 = vadd.f32 %v830_v17, %v558_v7  ;;  %2104 = vmatpush.bf16.msrb.mxu2 %v3252_v8  ;;  %v3263_v7 = vld [vmem:[%s4244_s3 + $0x288] sm:$0xff]  ;;  %v559_v8 = vperm.slane %v542_v59, 0  ;;  %v3246_v17 = vld [vmem:[%s4244_s3 + $0x200] sm:$0xff] }
 0x7bf   :  { %v943_v21 = vmax.f32 %v805_v16, 0.0  ;;  %2130 = vmatpush.bf16.msra.mxu3 %v3268_v11  ;;  %v561_v11 = vperm.slane %v544_v62, 0  ;;  %v3308_v16 = vld [vmem:[%s4244_s3 + $0x3f0] sm:$0xff] }
 0x7c0   :  { %v945_v24 = vmax.f32 %v831_v19, 0.0  ;;  %2119 = vmatpush.bf16.msrb.mxu1 %v3258_v14 }
 0x7c1   :  { %v961_v27 = vpack.c.bf16 %v943_v21, %v943_v21  ;;  %2145 = vmatpush.bf16.msra.mxu0 %v3274_v18  ;;  %v3285_v21 = vld [vmem:[%s4244_s3 + $0x338] sm:$0xff] }
 0x7c2   :  { %v963_v29 = vpack.c.bf16 %v945_v24, %v945_v24  ;;  %2105 = vmatpush.bf16.msrb.mxu2 %v3251_v20  ;;  %v791_v30 = vpop.f32.mrf.mxu2  ;;  %v3262_v20 = vld [vmem:[%s4244_s3 + $0x280] sm:$0xff]  ;;  %v3301_v24 = vld [vmem:[%s4244_s3 + $0x3b8] sm:$0xff] }
 0x7c3   :  { %2131 = vmatpush.bf16.msra.mxu3 %v3267_v22  ;;  %v792_v34 = vadd.f32 %v791_v30, %v555_v23  ;;  %v817_v35 = vpop.f32.mrf.mxu3  ;;  %2072 = vmatmul.bf16.vlgmr.msra.gmra.mxu1 %v961_v27  ;;  %v3291_v27 = vld [vmem:[%s4244_s3 + $0x368] sm:$0xff] }
 0x7c4   :  { %v818_v38 = vadd.f32 %v817_v35, %v557_v25  ;;  %2098 = vmatmul.bf16.vlgmr.msrb.gmra.mxu0 %v963_v29  ;;  %2120 = vmatpush.bf16.msrb.mxu1 %v3257_v26  ;;  %v806_v39 = vpop.f32.mrf.mxu1  ;;  %v3307_v29 = vld [vmem:[%s4244_s3 + $0x3e8] sm:$0xff]  ;;  %v3290_v35 = vld [vmem:[%s4244_s3 + $0x360] sm:$0xff] }
 0x7c5   :  { %v942_v41 = vmax.f32 %v792_v34, 0.0  ;;  %2146 = vmatpush.bf16.msra.mxu0 %v3273_v28  ;;  %v832_v42 = vpop.f32.mrf.mxu0  ;;  %v3300_v34 = vld [vmem:[%s4244_s3 + $0x3b0] sm:$0xff] }
 0x7c6   :  { %v944_v45 = vmax.f32 %v818_v38, 0.0  ;;  %2106 = vmatpush.bf16.msrb.mxu2 %v3250_v31  ;;  %v3284_v31 = vld [vmem:[%s4244_s3 + $0x330] sm:$0xff]  ;;  %v533_v42 = vld [vmem:[%s4243_s2 + $0x138] sm:$0x11] }
 0x7c7   :  { %v960_v49 = vpack.c.bf16 %v942_v41, %v942_v41  ;;  %2132 = vmatpush.bf16.msra.mxu3 %v3266_v10  ;;  %v532_v39 = vld [vmem:[%s4243_s2 + $0x130] sm:$0x11]  ;;  %s3392_s2 = smov 32  }
 0x7c8   :  { %v962_v48 = vpack.c.bf16 %v944_v45, %v944_v45  ;;  %2121 = vmatpush.bf16.msrb.mxu1 %v3256_v40  ;;  %v3283_v40 = vld [vmem:[%s4244_s3 + $0x328] sm:$0xff]  ;;  %v3289_v45 = vld [vmem:[%s4244_s3 + $0x358] sm:$0xff] }
 0x7c9   :  { %2147 = vmatpush.bf16.msra.mxu0 %v3272_v43  ;;  %2059 = vmatmul.bf16.vlgmr.msra.gmra.mxu2 %v960_v49  ;;  %v3299_v43 = vld [vmem:[%s4244_s3 + $0x3a8] sm:$0xff]  ;;  %v549_v49 = vunpack.c.h.bf16 %v533_v42 }
 0x7ca   :  { %2085 = vmatmul.bf16.vlgmr.msrb.gmra.mxu3 %v962_v48  ;;  %2107 = vmatpush.bf16.msrb.mxu2 %v3249_v46  ;;  %v793_v54 = vpop.f32.mrf.mxu2  ;;  %v547_v46 = vunpack.c.h.bf16 %v532_v39  ;;  %v3298_v48 = vld [vmem:[%s4244_s3 + $0x3a0] sm:$0xff] }
 0x7cb   :  { %2133 = vmatpush.bf16.msra.mxu3 %v3265_v50  ;;  %v819_v57 = vpop.f32.mrf.mxu3  ;;  %v3282_v50 = vld [vmem:[%s4244_s3 + $0x320] sm:$0xff]  ;;  %v3304_v54 = vld [vmem:[%s4244_s3 + $0x3d0] sm:$0xff] }
 0x7cc   :  { %2122 = vmatpush.bf16.msrb.mxu1 %v3255_v51  ;;  %v856_v60 = vpop.f32.mrf.mxu1  ;;  %v3288_v51 = vld [vmem:[%s4244_s3 + $0x350] sm:$0xff]  ;;  %v3281_v57 = vld [vmem:[%s4244_s3 + $0x318] sm:$0xff] }
 0x7cd   :  { %2148 = vmatpush.bf16.msra.mxu0 %v3271_v52  ;;  %v857_v63 = vadd.f32 %v856_v60, %v560_v53  ;;  %v882_v0 = vpop.f32.mrf.mxu0  ;;  %v564_v52 = vperm.slane %v547_v46, 0  ;;  %v3297_v60 = vld [vmem:[%s4244_s3 + $0x398] sm:$0xff] }
 0x7ce   :  { %v883_v3 = vadd.f32 %v882_v0, %v562_v55  ;;  %2108 = vmatpush.bf16.msrb.mxu2 %v3248_v56  ;;  %v566_v55 = vperm.slane %v549_v49, 0 }
 0x7cf   :  { %v947_v6 = vmax.f32 %v857_v63, 0.0  ;;  %2134 = vmatpush.bf16.msra.mxu3 %v3264_v58  ;;  %v546_v58 = vunpack.c.l.bf16 %v532_v39  ;;  %v3287_v63 = vld [vmem:[%s4244_s3 + $0x348] sm:$0xff] }
 0x7d0   :  { %v949_v9 = vmax.f32 %v883_v3, 0.0  ;;  %2123 = vmatpush.bf16.msrb.mxu1 %v3254_v61  ;;  %v548_v61 = vunpack.c.l.bf16 %v533_v42  ;;  %v3280_v3 = vld [vmem:[%s4244_s3 + $0x310] sm:$0xff] }
 0x7d1   :  { %v965_v12 = vpack.c.bf16 %v947_v6, %v947_v6  ;;  %2149 = vmatpush.bf16.msra.mxu0 %v3270_v1  ;;  %v3303_v1 = vld [vmem:[%s4244_s3 + $0x3c8] sm:$0xff] }
 0x7d2   :  { %v967_v14 = vpack.c.bf16 %v949_v9, %v949_v9  ;;  %2109 = vmatpush.bf16.msrb.mxu2 %v3247_v5  ;;  %v843_v15 = vpop.f32.mrf.mxu2  ;;  %v3296_v5 = vld [vmem:[%s4244_s3 + $0x390] sm:$0xff]  ;;  %v565_v6 = vperm.slane %v548_v61, 0 }
 0x7d3   :  { %2135 = vmatpush.bf16.msra.mxu3 %v3263_v7  ;;  %v844_v18 = vadd.f32 %v843_v15, %v559_v8  ;;  %v869_v19 = vpop.f32.mrf.mxu3  ;;  %2124 = vmatmul.bf16.vlgmr.msrb.gmra.mxu1 %v965_v12  ;;  %v3286_v7 = vld [vmem:[%s4244_s3 + $0x340] sm:$0xff] }
 0x7d4   :  { %2168 = vmatpush.bf16.msra.mxu1 %v3293_v2  ;;  %v870_v22 = vadd.f32 %v869_v19, %v561_v11  ;;  %2150 = vmatmul.bf16.vlgmr.msra.gmra.mxu0 %v967_v14  ;;  %v858_v23 = vpop.f32.mrf.mxu1  ;;  %v3302_v11 = vld [vmem:[%s4244_s3 + $0x3c0] sm:$0xff]  ;;  %v3279_v14 = vld [vmem:[%s4244_s3 + $0x308] sm:$0xff] }
 0x7d5   :  { %2194 = vmatpush.bf16.msrb.mxu0 %v3309_v4  ;;  %v946_v25 = vmax.f32 %v844_v18, 0.0  ;;  %v884_v26 = vpop.f32.mrf.mxu0  ;;  %v563_v4 = vperm.slane %v546_v58, 0 }
 0x7d6   :  { %v948_v28 = vmax.f32 %v870_v22, 0.0  ;;  %2110 = vmatpush.bf16.msrb.mxu2 %v3246_v17  ;;  %v3294_v22 = vld [vmem:[%s4244_s3 + $0x380] sm:$0xff] }
 0x7d7   :  { %v964_v30 = vpack.c.bf16 %v946_v25, %v946_v25  ;;  %2136 = vmatpush.bf16.msra.mxu3 %v3262_v20  ;;  %v3278_v20 = vld [vmem:[%s4244_s3 + $0x300] sm:$0xff] }
 0x7d8   :  { %2169 = vmatpush.bf16.msra.mxu1 %v3292_v13  ;;  %v966_v32 = vpack.c.bf16 %v948_v28, %v948_v28 }
 0x7d9   :  { %2195 = vmatpush.bf16.msrb.mxu0 %v3308_v16  ;;  %2111 = vmatmul.bf16.vlgmr.msrb.gmra.mxu2 %v964_v30  ;;  %v3295_v16 = vld [vmem:[%s4244_s3 + $0x388] sm:$0xff] }
 0x7da   :  { %2155 = vmatpush.bf16.msra.mxu2 %v3285_v21  ;;  %2137 = vmatmul.bf16.vlgmr.msra.gmra.mxu3 %v966_v32  ;;  %v845_v10 = vpop.f32.mrf.mxu2 }
 0x7db   :  { %2181 = vmatpush.bf16.msrb.mxu3 %v3301_v24  ;;  %v871_v38 = vpop.f32.mrf.mxu3 }
 0x7dc   :  { %2170 = vmatpush.bf16.msra.mxu1 %v3291_v27  ;;  %v908_v41 = vpop.f32.mrf.mxu1  ;;  %v2626_v38 = vld [vmem:[%s4242_s1 + $0x145] ss:$8 sm:$0x3] }
 0x7dd   :  { %2196 = vmatpush.bf16.msrb.mxu0 %v3307_v29  ;;  %v934_v36 = vpop.f32.mrf.mxu0  ;;  %v909_v0 = vadd.f32 %v908_v41, %v564_v52 }
 0x7de   :  { %2156 = vmatpush.bf16.msra.mxu2 %v3284_v31  ;;  %v935_v2 = vadd.f32 %v934_v36, %v566_v55 }
 0x7df   :  { %2182 = vmatpush.bf16.msrb.mxu3 %v3300_v34  ;;  %v951_v8 = vmax.f32 %v909_v0, 0.0 }
 0x7e0   :  { %2171 = vmatpush.bf16.msra.mxu1 %v3290_v35  ;;  %v953_v12 = vmax.f32 %v935_v2, 0.0 }
 0x7e1   :  { %2197 = vmatpush.bf16.msrb.mxu0 %v3306_v37  ;;  %v969_v18 = vpack.c.bf16 %v951_v8, %v951_v8 }
 0x7e2   :  { %2157 = vmatpush.bf16.msra.mxu2 %v3283_v40  ;;  %v895_v53 = vpop.f32.mrf.mxu2  ;;  %v971_v19 = vpack.c.bf16 %v953_v12, %v953_v12  ;;  %v1229_v40 = vperm.slane %v2626_v38, 0 }
 0x7e3   :  { %2183 = vmatpush.bf16.msrb.mxu3 %v3299_v43  ;;  %v921_v56 = vpop.f32.mrf.mxu3  ;;  %v896_v15 = vadd.f32 %v895_v53, %v563_v4 }
 0x7e4   :  { %2172 = vmatpush.bf16.msra.mxu1 %v3289_v45  ;;  %v910_v59 = vpop.f32.mrf.mxu1  ;;  %v922_v17 = vadd.f32 %v921_v56, %v565_v6 }
 0x7e5   :  { %2198 = vmatpush.bf16.msrb.mxu0 %v3305_v47  ;;  %v936_v62 = vpop.f32.mrf.mxu0  ;;  %v950_v21 = vmax.f32 %v896_v15, 0.0 }
 0x7e6   :  { %2158 = vmatpush.bf16.msra.mxu2 %v3282_v50  ;;  %v952_v23 = vmax.f32 %v922_v17, 0.0 }
 0x7e7   :  { %2184 = vmatpush.bf16.msrb.mxu3 %v3298_v48  ;;  %v968_v24 = vpack.c.bf16 %v950_v21, %v950_v21  ;;  %v2248_v21 = vld [vmem:[%s4242_s1 + $0xd0] sm:$0xff] }
 0x7e8   :  { %2173 = vmatpush.bf16.msra.mxu1 %v3288_v51  ;;  %v970_v25 = vpack.c.bf16 %v952_v23, %v952_v23  ;;  %v2247_v23 = vld [vmem:[%s4242_s1 + $0xc8] sm:$0xff] }
 0x7e9   :  { %2199 = vmatpush.bf16.msrb.mxu0 %v3304_v54 }
 0x7ea   :  { %2159 = vmatpush.bf16.msra.mxu2 %v3281_v57  ;;  %v897_v9 = vpop.f32.mrf.mxu2 }
 0x7eb   :  { %2185 = vmatpush.bf16.msrb.mxu3 %v3297_v60  ;;  %v923_v13 = vpop.f32.mrf.mxu3 }
 0x7ec   :  { %2174 = vmatpush.bf16.msra.mxu1 %v3287_v63 }
 0x7ed   :  { %2200 = vmatpush.bf16.msrb.mxu0 %v3303_v1 }
 0x7ee   :  { %2160 = vmatpush.bf16.msra.mxu2 %v3280_v3 }
 0x7ef   :  { %2186 = vmatpush.bf16.msrb.mxu3 %v3296_v5 }
 0x7f0   :  { %2175 = vmatpush.bf16.msra.mxu1 %v3286_v7 }
 0x7f1   :  { %2201 = vmatpush.bf16.msrb.mxu0 %v3302_v11 }
 0x7f2   :  { %2161 = vmatpush.bf16.msra.mxu2 %v3279_v14 }
 0x7f3   :  { %2187 = vmatpush.bf16.msrb.mxu3 %v3295_v16  ;;  %2176 = vmatmul.bf16.vlgmr.msra.gmra.mxu1 %v969_v18 }
 0x7f4   :  { %2202 = vmatmul.bf16.vlgmr.msrb.gmra.mxu0 %v971_v19 }
 0x7f6   :  { %2162 = vmatpush.bf16.msra.mxu2 %v3278_v20 }
 0x7f7   :  { %2188 = vmatpush.bf16.msrb.mxu3 %v3294_v22  ;;  %v2249_v22 = vld [vmem:[%s4242_s1 + $0xd8] sm:$0xff] }
 0x7f8   :  { %2285 = vmatpush.msrb.mxu1 %v2249_v22 }
 0x7f9   :  { %2163 = vmatmul.bf16.vlgmr.msra.gmra.mxu2 %v968_v24  ;;  %v2244_v24 = vld [vmem:[%s4242_s1 + $0xb0] sm:$0xff] }
 0x7fa   :  { %2189 = vmatmul.bf16.vlgmr.msrb.gmra.mxu3 %v970_v25  ;;  %2265 = vmatpush.msrb.mxu2 %v2248_v21  ;;  %v2245_v25 = vld [vmem:[%s4242_s1 + $0xb8] sm:$0xff] }
 0x7fb   :  { %2286 = vmatpush.msrb.mxu1 %v2247_v23  ;;  %v3145_v23 = vld [vmem:[%s4242_s1 + $0x151] ss:$8 sm:$0x3] }
 0x7fd   :  { %2287 = vmatpush.msrb.mxu1 %v2245_v25  ;;  %v2414_v25 = vld [vmem:[%s4242_s1 + $0x120] sm:$0xff] }
 0x830   :  { %v2021_v26 = vpop.f32.mrf.mxu1 }
 0x831   :  { %v2047_v27 = vpop.f32.mrf.mxu0 }
 0x838   :  { %v2023_v28 = vpop.f32.mrf.mxu1 }
 0x839   :  { %v2049_v29 = vpop.f32.mrf.mxu0 }
 0x83c   :  { %v2008_v30 = vpop.f32.mrf.mxu2 }
 0x83d   :  { %v2034_v31 = vpop.f32.mrf.mxu3  ;;  %v2009_v43 = vadd.f32 %v2008_v30, %v1229_v40 }
 0x83f   :  { %v2022_v46 = vadd.f32 %v2021_v26, %v2009_v43  ;;  %v2242_v26 = vld [vmem:[%s4242_s1 + $0xa0] sm:$0xff] }
 0x840   :  { %v2073_v32 = vpop.f32.mrf.mxu1 }
 0x841   :  { %v2099_v34 = vpop.f32.mrf.mxu0  ;;  %v2035_v50 = vadd.f32 %v2034_v31, %v2022_v46 }
 0x843   :  { %v2048_v52 = vadd.f32 %v2047_v27, %v2035_v50  ;;  %v2243_v27 = vld [vmem:[%s4242_s1 + $0xa8] sm:$0xff] }
 0x844   :  { %v2010_v35 = vpop.f32.mrf.mxu2  ;;  %2288 = vmatpush.msrb.mxu1 %v2243_v27 }
 0x845   :  { %v2036_v10 = vpop.f32.mrf.mxu3 }
 0x846   :  { %v3139_v10 = vld [vmem:[%s4242_s1 + $0x146] ss:$8 sm:$0x3] }
 0x847   :  { %v2235_v40 = vperm.slane %v3139_v10, 0 }
 0x848   :  { %v2075_v37 = vpop.f32.mrf.mxu1 }
 0x849   :  { %v2101_v39 = vpop.f32.mrf.mxu0 }
 0x84a   :  { %v3140_v39 = vld [vmem:[%s4242_s1 + $0x147] ss:$8 sm:$0x3] }
 0x84c   :  { %v2060_v41 = vpop.f32.mrf.mxu2 }
 0x84d   :  { %v2086_v42 = vpop.f32.mrf.mxu3  ;;  %v2061_v55 = vadd.f32 %v2060_v41, %v2048_v52 }
 0x84f   :  { %v2074_v56 = vadd.f32 %v2073_v32, %v2061_v55  ;;  %v3143_v55 = vld [vmem:[%s4242_s1 + $0x150] ss:$8 sm:$0x3] }
 0x850   :  { %v2125_v36 = vpop.f32.mrf.mxu1 }
 0x851   :  { %v2151_v45 = vpop.f32.mrf.mxu0  ;;  %v2087_v59 = vadd.f32 %v2086_v42, %v2074_v56  ;;  %v2239_v42 = vperm.slane %v3140_v39, 0 }
 0x853   :  { %v2100_v60 = vadd.f32 %v2099_v34, %v2087_v59 }
 0x854   :  { %v2062_v47 = vpop.f32.mrf.mxu2 }
 0x855   :  { %v2088_v49 = vpop.f32.mrf.mxu3 }
 0x858   :  { %v2127_v48 = vpop.f32.mrf.mxu1 }
 0x859   :  { %v2153_v51 = vpop.f32.mrf.mxu0 }
 0x85c   :  { %v2112_v53 = vpop.f32.mrf.mxu2 }
 0x85d   :  { %v2138_v54 = vpop.f32.mrf.mxu3  ;;  %v2113_v61 = vadd.f32 %v2112_v53, %v2100_v60 }
 0x85f   :  { %v2126_v0 = vadd.f32 %v2125_v36, %v2113_v61 }
 0x861   :  { %v2139_v1 = vadd.f32 %v2138_v54, %v2126_v0 }
 0x863   :  { %v2152_v4 = vadd.f32 %v2151_v45, %v2139_v1 }
 0x864   :  { %v2114_v57 = vpop.f32.mrf.mxu2 }
 0x865   :  { %v2140_v58 = vpop.f32.mrf.mxu3 }
 0x870   :  { %v2177_v62 = vpop.f32.mrf.mxu1 }
 0x871   :  { %v2203_v63 = vpop.f32.mrf.mxu0 }
 0x878   :  { %v2179_v2 = vpop.f32.mrf.mxu1 }
 0x879   :  { %v2205_v3 = vpop.f32.mrf.mxu0  ;;  %v2367_v2 = vld [vmem:[%s4242_s1 + $0x100] sm:$0xff] }
 0x87c   :  { %v2164_v5 = vpop.f32.mrf.mxu2 }
 0x87d   :  { %v2165_v6 = vadd.f32 %v2164_v5, %v2152_v4  ;;  %v2190_v7 = vpop.f32.mrf.mxu3  ;;  %v2366_v4 = vld [vmem:[%s4242_s1 + $0xf0] sm:$0xff] }
 0x87f   :  { %v2178_v8 = vadd.f32 %v2177_v62, %v2165_v6  ;;  %v2365_v6 = vld [vmem:[%s4242_s1 + $0xe0] sm:$0xff] }
 0x881   :  { %v2191_v9 = vadd.f32 %v2190_v7, %v2178_v8 }
 0x883   :  { %v2204_v11 = vadd.f32 %v2203_v63, %v2191_v9  ;;  %v2368_v63 = vld [vmem:[%s4242_s1 + $0x110] sm:$0xff] }
 0x884   :  { %v2166_v12 = vpop.f32.mrf.mxu2  ;;  %2386 = vmatpush.msra.mxu3 %v2368_v63 }
 0x885   :  { %v2192_v13 = vpop.f32.mrf.mxu3  ;;  %v2211_v14 = vadd.f32 %v2204_v11, %v3638_v44  ;;  %v2246_v44 = vld [vmem:[%s4242_s1 + $0xc0] sm:$0xff] }
 0x886   :  { %2266 = vmatpush.msrb.mxu2 %v2246_v44  ;;  %2387 = vmatpush.msra.mxu3 %v2367_v2 }
 0x887   :  { %v2212_v15 = vsel %vm60_vm1, %v2211_v14, 0.0 }
 0x888   :  { %2213 = vadd.xlane.f32.xlu2 %v2212_v15  ;;  %2267 = vmatpush.msrb.mxu2 %v2244_v24  ;;  %v2415_v24 = vld [vmem:[%s4242_s1 + $0x130] sm:$0xff] }
 0x889   :  { %2388 = vmatpush.msra.mxu3 %v2366_v4  ;;  %2435 = vmatpush.msra.mxu0 %v2415_v24 }
 0x88a   :  { %2268 = vmatpush.msrb.mxu2 %v2242_v26 }
 0x88b   :  { %2389 = vmatpush.msra.mxu3 %v2365_v6  ;;  %2436 = vmatpush.msra.mxu0 %v2414_v25 }
 0x8fb   :  { %v2214_v16 = vpop.xlane.xlu2 %2213 }
 0x8fc   :  { %v2215_v17 = vmul.f32 %v2214_v16, %v3511_v33 }
 0x8fe   :  { %v2216_v18 = vsub.f32 %v2211_v14, %v2215_v17 }
 0x900   :  { %v2217_v19 = vmul.f32 %v2216_v18, %v2216_v18 }
 0x902   :  { %v2218_v20 = vsel %vm60_vm1, %v2217_v19, 0.0 }
 0x903   :  { %2219 = vadd.xlane.f32.xlu0 %v2218_v20 }
 0x976   :  { %v2220_v28 = vpop.xlane.xlu0 %2219 }
 0x977   :  { %v2221_v29 = vmul.f32 %v2220_v28, %v3511_v33 }
 0x979   :  { %v2222_v30 = vadd.f32 1e-05, %v2221_v29 }
 0x97b   :  { %3344 = vrsqrt.f32 %v2222_v30  ;;  %vm2229_vm8 = vweird.f32 %v2222_v30 }
 0x981   :  { %v3345_v31 = vpop.eup %3344 }
 0x982   :  { %v2224_v32 = vmul.f32 %v3345_v31, %v2222_v30  ;;  %vm2230_vm7 = vweird.f32 %v3345_v31 }
 0x983   :  { %vm2231_vm9 = vmor %vm2229_vm8, %vm2230_vm7 }
 0x984   :  { %v2225_v34 = vmul.f32 %v3345_v31, %v2224_v32 }
 0x986   :  { %v2226_v35 = vmul.f32 0.5, %v2225_v34 }
 0x988   :  { %v2227_v37 = vsub.f32 1.5, %v2226_v35 }
 0x98a   :  { %v2228_v38 = vmul.f32 %v3345_v31, %v2227_v37 }
 0x98c   :  { %v2232_v33 = vsel %vm2231_vm9, %v3345_v31, %v2228_v38 }
 0x98d   :  { %v2233_v41 = vmul.f32 %v2232_v33, %v2216_v18 }
 0x98f   :  { %v2237_v43 = vmul.f32 %v2235_v40, %v2233_v41 }
 0x991   :  { %v2241_v36 = vadd.f32 %v2239_v42, %v2237_v43  ;;  %v3148_v42 = vld [vmem:[%s4242_s1 + $0x152] ss:$8 sm:$0x3] }
 0x993   :  { %3141 = vmatmul.msk.f32.vlgmr.msrb.gmra.mxu2 %vm60_vm1, %v2241_v36  ;;  %3142 = vmatmul.msk.f32.vlgmr.msrb.gmra.mxu1 %vm60_vm1, %v2241_v36 }
 0xa10   :  { %v2290_v49 = vpop.f32.mrf.mxu1 }
 0xa16   :  { %v2270_v45 = vpop.f32.mrf.mxu2 }
 0xa17   :  { %2297 = vst [vmem:[#allocation1] sm:$0xff] %v2270_v45  ;;  %v2295_v56 = vadd.f32 %v3143_v55, %v2270_v45 }
 0xa1e   :  { %v2299_v46 = vld [vmem:[#allocation1 + $0x1] ss:$9 sm:$0xff] }
 0xa1f   :  { %2304 = vst [vmem:[#allocation1] sm:$0xff] %v2270_v45  ;;  %2300 = vrot.lane.b32.xlu0 %v2299_v46, %s3381_s7 }
 0xa26   :  { %v2306_v47 = vld [vmem:[#allocation1 + $0x2] ss:$9 sm:$0xff] }
 0xa27   :  { %2311 = vst [vmem:[#allocation1] sm:$0xff] %v2270_v45  ;;  %2307 = vrot.lane.b32.xlu1 %v2306_v47, %s3386_s14 }
 0xa2e   :  { %v2313_v50 = vld [vmem:[#allocation1 + $0x3] ss:$9 sm:$0xff] }
 0xa2f   :  { %2314 = vrot.lane.b32.xlu2 %v2313_v50, %s3392_s2  ;;  %2319 = vst [vmem:[#allocation1] sm:$0xff] %v2290_v49 }
 0xa36   :  { %v2321_v48 = vld [vmem:[#allocation1 + $0x4] ss:$9 sm:$0xff] }
 0xa37   :  { %2324 = vst [vmem:[#allocation1] sm:$0xff] %v2290_v49 }
 0xa3e   :  { %v2326_v51 = vld [vmem:[#allocation1 + $0x5] ss:$9 sm:$0xff] }
 0xa3f   :  { %2327 = vrot.lane.b32.xlu0 %v2326_v51, %s3381_s7  ;;  %2331 = vst [vmem:[#allocation1] sm:$0xff] %v2290_v49 }
 0xa46   :  { %v2333_v52 = vld [vmem:[#allocation1 + $0x6] ss:$9 sm:$0xff] }
 0xa47   :  { %2334 = vrot.lane.b32.xlu0 %v2333_v52, %s3386_s14  ;;  %2338 = vst [vmem:[#allocation1] sm:$0xff] %v2290_v49 }
 0xa4e   :  { %v2340_v53 = vld [vmem:[#allocation1 + $0x7] ss:$9 sm:$0xff] }
 0xa4f   :  { %2341 = vrot.lane.b32.xlu1 %v2340_v53, %s3392_s2 }
 0xa89   :  { %v2315_v61 = vpop.permute.xlu2 %2314 }
 0xa91   :  { %v2301_v54 = vpop.permute.xlu0 %2300 }
 0xa92   :  { %v2303_v58 = vadd.f32 %v2301_v54, %v2295_v56 }
 0xa99   :  { %v2308_v57 = vpop.permute.xlu1 %2307 }
 0xa9a   :  { %v2310_v60 = vadd.f32 %v2308_v57, %v2303_v58 }
 0xa9c   :  { %v2317_v62 = vadd.f32 %v2315_v61, %v2310_v60 }
 0xa9e   :  { %v2323_v0 = vadd.f32 %v2321_v48, %v2317_v62 }
 0xab1   :  { %v2328_v59 = vpop.permute.xlu0 %2327 }
 0xab2   :  { %v2330_v3 = vadd.f32 %v2328_v59, %v2323_v0 }
 0xab9   :  { %v2335_v1 = vpop.permute.xlu0 %2334 }
 0xaba   :  { %v2337_v5 = vadd.f32 %v2335_v1, %v2330_v3 }
 0xac1   :  { %v2342_v7 = vpop.permute.xlu1 %2341 }
 0xac2   :  { %v2344_v8 = vadd.f32 %v2342_v7, %v2337_v5 }
 0xac4   :  { %v3144_v9 = vmul.f32 -1.442695, %v2344_v8 }
 0xac6   :  { %3346 = vpow2.f32 %v3144_v9 }
 0xacc   :  { %v3347_v11 = vpop.eup %3346 }
 0xacd   :  { %v2348_v12 = vadd.f32 1.0, %v3347_v11 }
 0xacf   :  { %3348 = vrcp.f32 %v2348_v12  ;;  %v2360_v16 = vand.u32 2147483648, %v2348_v12  ;;  %v2358_v18 = vand.u32 2147483647, %v2348_v12  ;;  %vm2354_vm11 = vweird.f32 %v2348_v12 }
 0xad1   :  { %v2361_v20 = vor.u32 1.1754944e-38, %v2360_v16  ;;  %vm2359_vm13 = vcmp.eq.f32.partialorder %v2358_v18, 8.507059e+37 }
 0xad5   :  { %v3349_v13 = vpop.eup %3348 }
 0xad6   :  { %v2350_v14 = vmul.f32 %v3349_v13, %v2348_v12  ;;  %vm2355_vm10 = vweird.f32 %v3349_v13 }
 0xad7   :  { %vm2356_vm12 = vmor %vm2354_vm11, %vm2355_vm10 }
 0xad8   :  { %v2351_v15 = vsub.f32 1.0, %v2350_v14 }
 0xada   :  { %v2352_v17 = vmul.f32 %v3349_v13, %v2351_v15 }
 0xadc   :  { %v2353_v19 = vadd.f32 %v3349_v13, %v2352_v17 }
 0xade   :  { %v2357_v21 = vsel %vm2356_vm12, %v3349_v13, %v2353_v19 }
 0xadf   :  { %v2362_v22 = vsel %vm2359_vm13, %v2361_v20, %v2357_v21 }
 0xae0   :  { %v2364_v44 = vmul.f32 %v2362_v22, %v2344_v8 }
 0xae2   :  { %3146 = vmatmul.msk.f32.vlgmr.msra.gmra.mxu3 %vm60_vm1, %v2364_v44 }
 0xb65   :  { %v2391_v26 = vpop.f32.mrf.mxu3 }
 0xb66   :  { %v2392_v27 = vadd.f32 %v3145_v23, %v2391_v26 }
 0xb68   :  { %v3147_v28 = vmul.f32 -1.442695, %v2392_v27 }
 0xb6a   :  { %3350 = vpow2.f32 %v3147_v28 }
 0xb70   :  { %v3351_v29 = vpop.eup %3350 }
 0xb71   :  { %v2397_v30 = vadd.f32 1.0, %v3351_v29 }
 0xb73   :  { %3352 = vrcp.f32 %v2397_v30  ;;  %v2409_v35 = vand.u32 2147483648, %v2397_v30  ;;  %v2407_v37 = vand.u32 2147483647, %v2397_v30  ;;  %vm2403_vm15 = vweird.f32 %v2397_v30 }
 0xb75   :  { %v2410_v39 = vor.u32 1.1754944e-38, %v2409_v35  ;;  %vm2408_vm2 = vcmp.eq.f32.partialorder %v2407_v37, 8.507059e+37 }
 0xb79   :  { %v3353_v31 = vpop.eup %3352 }
 0xb7a   :  { %v2399_v32 = vmul.f32 %v3353_v31, %v2397_v30  ;;  %vm2404_vm14 = vweird.f32 %v3353_v31 }
 0xb7b   :  { %vm2405_vm1 = vmor %vm2403_vm15, %vm2404_vm14 }
 0xb7c   :  { %v2400_v34 = vsub.f32 1.0, %v2399_v32 }
 0xb7e   :  { %v2401_v10 = vmul.f32 %v3353_v31, %v2400_v34 }
 0xb80   :  { %v2402_v38 = vadd.f32 %v3353_v31, %v2401_v10 }
 0xb82   :  { %v2406_v40 = vsel %vm2405_vm1, %v3353_v31, %v2402_v38 }
 0xb83   :  { %v2411_v33 = vsel %vm2408_vm2, %v2410_v39, %v2406_v40 }
 0xb84   :  { %v2413_v41 = vmul.f32 %v2411_v33, %v2392_v27 }
 0xb86   :  { %3149 = vmatmul.msk.f32.vlgmr.msra.gmra.mxu0 %vm27_vm0, %v2413_v41 }
 0xc03   :  { %v2438_v43 = vpop.f32.mrf.mxu0 }
 0xc04   :  { %v2439_v36 = vadd.f32 %v3148_v42, %v2438_v43 }
 0xc06   :  { %2442 = vst.msk [vmem:[#allocation2] sm:$0x1] %vm2441_vm3, %v2439_v36 }
 0xc07   :  { %2453 = dma.vmem_to_hbm [thread:$0]  %s2449_s16, 16, %s2451_s19, [#allocation3]  }
 0xc08   :  { %3378 = dma.done.wait [#allocation3], 16  }
 0xc09   :  { %3379 = vsyncadd [#allocation3], 4294967280 }
 0xc0a   :  { %2458 = vsyncpa [#allocation3], 1 }

</bundles_post_ra>
